<compile_context>
chip_gen: v5e
topology: v5e:2x2
jax: 0.10.0
libtpu: 0.0.40
codegen_flags: <defaults>
</compile_context>

<pallas_src>
import jax
import jax.numpy as jnp
from jax.experimental import pallas as pl
from jax.experimental.pallas import tpu as pltpu


_VMEM_LIMIT = 32 * 1024 * 1024  # explicit scoped-VMEM budget, safe on v5e/v6e/v7x


def _round_up(x, m):
    return (x + m - 1) // m * m


# ---------------------------------------------------------------------------
# Pallas kernels
# ---------------------------------------------------------------------------
def _conv_relu_pool_kernel(x_ref, w_ref, b_ref, o_ref):
    """Fused im2col-conv matmul + bias + ReLU + 2x2 max-pool epilogue.

    x_ref : (4, TM, K)  bf16  -- 4 pooling phases of TM pooled output pixels
    w_ref : (K, Cout)   bf16  -- im2col weights, column order (ky, kx, cin)
    b_ref : (1, Cout)   f32
    o_ref : (TM, Cout)  bf16  -- pooled activations
    """
    w = w_ref[...]
    # max over the 4 pool phases; bias is phase-invariant and ReLU is monotone,
    # so relu(max_p(conv_p) + b) == maxpool(relu(conv + b)).
    m = jnp.dot(x_ref[0], w, preferred_element_type=jnp.float32)
    for p in range(1, 4):
        m = jnp.maximum(m, jnp.dot(x_ref[p], w, preferred_element_type=jnp.float32))
    o_ref[...] = jnp.maximum(m + b_ref[...], 0.0).astype(o_ref.dtype)


def _matmul_bias_kernel(x_ref, w_ref, b_ref, o_ref):
    # x: (TM, K) bf16, w: (K, N) bf16, b: (1, N) f32 -> o: (TM, N) f32
    acc = jnp.dot(x_ref[...], w_ref[...], preferred_element_type=jnp.float32)
    o_ref[...] = (acc + b_ref[...]).astype(o_ref.dtype)


# ---------------------------------------------------------------------------
# Layer wrappers (data rearrangement only; all compute is in the Pallas kernels)
# ---------------------------------------------------------------------------
def conv3x3_relu_pool(x, wmat, bias, *, tm_max=512):
    """3x3 conv (pad=1) + ReLU + 2x2 max-pool, fused in one Pallas kernel.

    x     : (B, H, W, Cin)  bf16 NHWC
    wmat  : (9*Cin, Cout)   bf16, row order (ky, kx, cin)
    bias  : (1, Cout)       f32
    returns (B, H//2, W//2, Cout) bf16
    """
    B, H, W, Cin = x.shape
    K, Cout = wmat.shape
    Ho, Wo = H // 2, W // 2

    # im2col patches, column order (ky, kx, cin) -- matches wmat rows.
    xp = jnp.pad(x, ((0, 0), (1, 1), (1, 1), (0, 0)))
    cols = [xp[:, ky:ky + H, kx:kx + W, :] for ky in range(3) for kx in range(3)]
    patches = jnp.concatenate(cols, axis=-1)          # (B, H, W, 9*Cin)
    # floor-truncate odd trailing row/col exactly like F.max_pool2d(x, 2)
    patches = patches[:, :2 * Ho, :2 * Wo, :]
    # stack the 2x2 pooling phases on the leading axis so the kernel can fuse
    # the pool: phase = hp*2 + wp, pixel = (b*Ho + ho)*Wo + wo
    patches = patches.reshape(B, Ho, 2, Wo, 2, K).transpose(2, 4, 0, 1, 3, 5)
    patches = patches.reshape(4, B * Ho * Wo, K)

    P = B * Ho * Wo
    tm = min(tm_max, _round_up(P, 8))                 # sublane-aligned M tile
    num_tiles = pl.cdiv(P, tm)
    p_pad = num_tiles * tm
    if p_pad != P:
        patches = jnp.pad(patches, ((0, 0), (0, p_pad - P), (0, 0)))

    out = pl.pallas_call(
        _conv_relu_pool_kernel,
        out_shape=jax.ShapeDtypeStruct((p_pad, Cout), jnp.bfloat16),
        grid=(num_tiles,),
        in_specs=[
            pl.BlockSpec((4, tm, K), lambda i: (0, i, 0)),   # activations: tiled over M
            pl.BlockSpec((K, Cout), lambda i: (0, 0)),       # weights: resident
            pl.BlockSpec((1, Cout), lambda i: (0, 0)),       # bias: resident
        ],
        out_specs=pl.BlockSpec((tm, Cout), lambda i: (i, 0)),
        compiler_params=pltpu.CompilerParams(
            dimension_semantics=("parallel",),
            vmem_limit_bytes=_VMEM_LIMIT),
    )(patches, wmat, bias)
    return out[:P].reshape(B, Ho, Wo, Cout)


def linear(x, wmat, bias, *, tm_max=256):
    """x: (M, K) bf16, wmat: (K, N) bf16, bias: (1, N) f32 -> (M, N) f32."""
    M, K = x.shape
    _, N = wmat.shape
    tm = min(tm_max, _round_up(M, 8))
    num_tiles = pl.cdiv(M, tm)
    m_pad = num_tiles * tm
    if m_pad != M:
        x = jnp.pad(x, ((0, m_pad - M), (0, 0)))

    out = pl.pallas_call(
        _matmul_bias_kernel,
        out_shape=jax.ShapeDtypeStruct((m_pad, N), jnp.float32),
        grid=(num_tiles,),
        in_specs=[
            pl.BlockSpec((tm, K), lambda i: (i, 0)),
            pl.BlockSpec((K, N), lambda i: (0, 0)),
            pl.BlockSpec((1, N), lambda i: (0, 0)),
        ],
        out_specs=pl.BlockSpec((tm, N), lambda i: (i, 0)),
        compiler_params=pltpu.CompilerParams(
            dimension_semantics=("parallel",),
            vmem_limit_bytes=_VMEM_LIMIT),
    )(x, wmat, bias)
    return out[:M]


# ---------------------------------------------------------------------------
# Parameter preparation (done ONCE, outside the forward pass)
# ---------------------------------------------------------------------------
def prepare_params(params):
    def conv_wmat(w):
        # (Cout, Cin, 3, 3) PyTorch -> (9*Cin, Cout), row order (ky, kx, cin)
        cout, cin = w.shape[0], w.shape[1]
        return jnp.transpose(w, (2, 3, 1, 0)).reshape(9 * cin, cout).astype(jnp.bfloat16)

    # PyTorch x.view(B, -1) flattens NCHW -> (c, h, w); we flatten NHWC -> (h, w, c),
    # so permute fc1 weight columns once here to keep numerics identical.
    fc_w = params["fc1_w"]                                            # (10, 576)
    fc_w_nhwc = fc_w.reshape(10, 64, 3, 3).transpose(0, 2, 3, 1).reshape(10, 576)

    return {
        "conv1_w": conv_wmat(params["conv1_w"]),
        "conv1_b": params["conv1_b"].reshape(1, -1).astype(jnp.float32),
        "conv2_w": conv_wmat(params["conv2_w"]),
        "conv2_b": params["conv2_b"].reshape(1, -1).astype(jnp.float32),
        "conv3_w": conv_wmat(params["conv3_w"]),
        "conv3_b": params["conv3_b"].reshape(1, -1).astype(jnp.float32),
        "fc1_w": fc_w_nhwc.T.astype(jnp.bfloat16),                    # (576, 10)
        "fc1_b": params["fc1_b"].reshape(1, -1).astype(jnp.float32),
    }


# ---------------------------------------------------------------------------
# Forward pass
# ---------------------------------------------------------------------------
@jax.jit
def mnist_convnet_forward(x_nchw, prepared):
    # x_nchw: (B, 1, 28, 28) like PyTorch; NHWC bf16 internally.
    x = jnp.transpose(x_nchw, (0, 2, 3, 1)).astype(jnp.bfloat16)

    x = conv3x3_relu_pool(x, prepared["conv1_w"], prepared["conv1_b"])  # (B, 14, 14, 16)
    x = conv3x3_relu_pool(x, prepared["conv2_w"], prepared["conv2_b"])  # (B, 7, 7, 32)
    x = conv3x3_relu_pool(x, prepared["conv3_w"], prepared["conv3_b"])  # (B, 3, 3, 64)

    B = x.shape[0]
    flat = x.reshape(B, -1)                                             # (B, 576) NHWC flatten
    logits = linear(flat, prepared["fc1_w"], prepared["fc1_b"])
    return logits                                                       # (B, 10) f32


def init_params(key):
    # Deterministic init mimicking PyTorch's default U(-1/sqrt(fan_in), +1/sqrt(fan_in)).
    def uniform(k, shape, fan_in):
        bound = 1.0 / jnp.sqrt(jnp.float32(fan_in))
        return jax.random.uniform(k, shape, jnp.float32, -bound, bound)

    ks = jax.random.split(key, 8)
    return {
        "conv1_w": uniform(ks[0], (16, 1, 3, 3), 1 * 9),
        "conv1_b": uniform(ks[1], (16,), 1 * 9),
        "conv2_w": uniform(ks[2], (32, 16, 3, 3), 16 * 9),
        "conv2_b": uniform(ks[3], (32,), 16 * 9),
        "conv3_w": uniform(ks[4], (64, 32, 3, 3), 32 * 9),
        "conv3_b": uniform(ks[5], (64,), 32 * 9),
        "fc1_w": uniform(ks[6], (10, 64 * 3 * 3), 64 * 3 * 3),
        "fc1_b": uniform(ks[7], (10,), 64 * 3 * 3),
    }


if __name__ == "__main__":
    key = jax.random.PRNGKey(0)
    k_x, k_p = jax.random.split(key)
    # Spatial must be 28 so the FC input is 64*3*3 = 576 as the module requires.
    x = jax.random.normal(k_x, (2, 1, 28, 28), dtype=jnp.float32)
    params = init_params(k_p)
    prepared = prepare_params(params)

    logits = mnist_convnet_forward(x, prepared)
    jax.block_until_ready(logits)
    assert logits.shape == (2, 10), logits.shape
    print("KERNEL_OK")
</pallas_src>

<mosaic_0001>
module attributes {stable_mosaic.version = 11 : i64} {
  func.func @_conv_relu_pool_kernel(%arg0: i32, %arg1: memref<4x392x9xbf16, #tpu.memory_space<vmem>>, %arg2: memref<9x16xbf16, #tpu.memory_space<vmem>>, %arg3: memref<1x16xf32, #tpu.memory_space<vmem>>, %arg4: memref<392x16xbf16, #tpu.memory_space<vmem>>) attributes {dimension_semantics = [#tpu.dimension_semantics<parallel>], iteration_bounds = array<i64: 1>, scalar_prefetch = 0 : i64, scratch_operands = 0 : i64, tpu.core_type = #tpu.core_type<tc>, window_params = [{transform_indices = @transform_0, window_bounds = array<i64: 4, 392, 9>}, {pipeline_mode = #tpu.pipeline_mode<synchronous>, transform_indices = @transform_1, window_bounds = array<i64: 9, 16>}, {pipeline_mode = #tpu.pipeline_mode<synchronous>, transform_indices = @transform_2, window_bounds = array<i64: 1, 16>}, {transform_indices = @transform_3, window_bounds = array<i64: 392, 16>}]} {
    %c0 = arith.constant 0 : index
    %c0_0 = arith.constant 0 : index
    %0 = vector.load %arg2[%c0, %c0_0] : memref<9x16xbf16, #tpu.memory_space<vmem>>, vector<9x16xbf16>
    %c0_1 = arith.constant 0 : index
    %c0_2 = arith.constant 0 : index
    %c0_3 = arith.constant 0 : index
    %1 = vector.load %arg1[%c0_1, %c0_2, %c0_3] : memref<4x392x9xbf16, #tpu.memory_space<vmem>>, vector<1x392x9xbf16>
    %2 = vector.shape_cast %1 : vector<1x392x9xbf16> to vector<392x9xbf16>
    %cst = arith.constant dense<0.000000e+00> : vector<392x16xf32>
    %3 = tpu.matmul %2, %0, %cst {dimension_numbers = #tpu.dot_dimension_numbers<[1], [0], [0], [1], [0, 0, 1, 1], [], []>} : vector<392x9xbf16>, vector<9x16xbf16>, vector<392x16xf32> -> vector<392x16xf32>
    %c1 = arith.constant 1 : index
    %c0_4 = arith.constant 0 : index
    %c0_5 = arith.constant 0 : index
    %4 = vector.load %arg1[%c1, %c0_4, %c0_5] : memref<4x392x9xbf16, #tpu.memory_space<vmem>>, vector<1x392x9xbf16>
    %5 = vector.shape_cast %4 : vector<1x392x9xbf16> to vector<392x9xbf16>
    %cst_6 = arith.constant dense<0.000000e+00> : vector<392x16xf32>
    %6 = tpu.matmul %5, %0, %cst_6 {dimension_numbers = #tpu.dot_dimension_numbers<[1], [0], [0], [1], [0, 0, 1, 1], [], []>} : vector<392x9xbf16>, vector<9x16xbf16>, vector<392x16xf32> -> vector<392x16xf32>
    %7 = arith.maximumf %3, %6 : vector<392x16xf32>
    %c2 = arith.constant 2 : index
    %c0_7 = arith.constant 0 : index
    %c0_8 = arith.constant 0 : index
    %8 = vector.load %arg1[%c2, %c0_7, %c0_8] : memref<4x392x9xbf16, #tpu.memory_space<vmem>>, vector<1x392x9xbf16>
    %9 = vector.shape_cast %8 : vector<1x392x9xbf16> to vector<392x9xbf16>
    %cst_9 = arith.constant dense<0.000000e+00> : vector<392x16xf32>
    %10 = tpu.matmul %9, %0, %cst_9 {dimension_numbers = #tpu.dot_dimension_numbers<[1], [0], [0], [1], [0, 0, 1, 1], [], []>} : vector<392x9xbf16>, vector<9x16xbf16>, vector<392x16xf32> -> vector<392x16xf32>
    %11 = arith.maximumf %7, %10 : vector<392x16xf32>
    %c3 = arith.constant 3 : index
    %c0_10 = arith.constant 0 : index
    %c0_11 = arith.constant 0 : index
    %12 = vector.load %arg1[%c3, %c0_10, %c0_11] : memref<4x392x9xbf16, #tpu.memory_space<vmem>>, vector<1x392x9xbf16>
    %13 = vector.shape_cast %12 : vector<1x392x9xbf16> to vector<392x9xbf16>
    %cst_12 = arith.constant dense<0.000000e+00> : vector<392x16xf32>
    %14 = tpu.matmul %13, %0, %cst_12 {dimension_numbers = #tpu.dot_dimension_numbers<[1], [0], [0], [1], [0, 0, 1, 1], [], []>} : vector<392x9xbf16>, vector<9x16xbf16>, vector<392x16xf32> -> vector<392x16xf32>
    %15 = arith.maximumf %11, %14 : vector<392x16xf32>
    %c0_13 = arith.constant 0 : index
    %c0_14 = arith.constant 0 : index
    %16 = vector.load %arg3[%c0_13, %c0_14] : memref<1x16xf32, #tpu.memory_space<vmem>>, vector<1x16xf32>
    %17 = vector.broadcast %16 : vector<1x16xf32> to vector<392x16xf32>
    %18 = arith.addf %15, %17 : vector<392x16xf32>
    %cst_15 = arith.constant 0.000000e+00 : f32
    %19 = vector.broadcast %cst_15 : f32 to vector<392x16xf32>
    %20 = arith.maximumf %18, %19 : vector<392x16xf32>
    %21 = arith.truncf %20 : vector<392x16xf32> to vector<392x16xbf16>
    %c0_16 = arith.constant 0 : index
    %c0_17 = arith.constant 0 : index
    %22 = vector.load %arg4[%c0_16, %c0_17] : memref<392x16xbf16, #tpu.memory_space<vmem>>, vector<392x16xbf16>
    tpu.vector_store %arg4[%c0_16, %c0_17], %21 {strides = array<i32>} : memref<392x16xbf16, #tpu.memory_space<vmem>>, vector<392x16xbf16>,
    return
  }
  func.func @transform_0(%arg0: i32) -> (i32, i32, i32) {
    %c0_i32 = arith.constant 0 : i32
    %c0_i32_0 = arith.constant 0 : i32
    %c0_i32_1 = arith.constant 0 : i32
    return %c0_i32, %arg0, %c0_i32_0 : i32, i32, i32
  }
  func.func @transform_1(%arg0: i32) -> (i32, i32) {
    %c0_i32 = arith.constant 0 : i32
    %c0_i32_0 = arith.constant 0 : i32
    %c0_i32_1 = arith.constant 0 : i32
    return %c0_i32, %c0_i32_0 : i32, i32
  }
  func.func @transform_2(%arg0: i32) -> (i32, i32) {
    %c0_i32 = arith.constant 0 : i32
    %c0_i32_0 = arith.constant 0 : i32
    %c0_i32_1 = arith.constant 0 : i32
    return %c0_i32, %c0_i32_0 : i32, i32
  }
  func.func @transform_3(%arg0: i32) -> (i32, i32) {
    %c0_i32 = arith.constant 0 : i32
    %c0_i32_0 = arith.constant 0 : i32
    return %arg0, %c0_i32 : i32, i32
  }
}

module attributes {stable_mosaic.version = 11 : i64} {
  func.func @_conv_relu_pool_kernel(%arg0: i32, %arg1: memref<4x104x144xbf16, #tpu.memory_space<vmem>>, %arg2: memref<144x32xbf16, #tpu.memory_space<vmem>>, %arg3: memref<1x32xf32, #tpu.memory_space<vmem>>, %arg4: memref<104x32xbf16, #tpu.memory_space<vmem>>) attributes {dimension_semantics = [#tpu.dimension_semantics<parallel>], iteration_bounds = array<i64: 1>, scalar_prefetch = 0 : i64, scratch_operands = 0 : i64, tpu.core_type = #tpu.core_type<tc>, window_params = [{transform_indices = @transform_0, window_bounds = array<i64: 4, 104, 144>}, {pipeline_mode = #tpu.pipeline_mode<synchronous>, transform_indices = @transform_1, window_bounds = array<i64: 144, 32>}, {pipeline_mode = #tpu.pipeline_mode<synchronous>, transform_indices = @transform_2, window_bounds = array<i64: 1, 32>}, {transform_indices = @transform_3, window_bounds = array<i64: 104, 32>}]} {
    %c0 = arith.constant 0 : index
    %c0_0 = arith.constant 0 : index
    %0 = vector.load %arg2[%c0, %c0_0] : memref<144x32xbf16, #tpu.memory_space<vmem>>, vector<144x32xbf16>
    %c0_1 = arith.constant 0 : index
    %c0_2 = arith.constant 0 : index
    %c0_3 = arith.constant 0 : index
    %1 = vector.load %arg1[%c0_1, %c0_2, %c0_3] : memref<4x104x144xbf16, #tpu.memory_space<vmem>>, vector<1x104x144xbf16>
    %2 = vector.shape_cast %1 : vector<1x104x144xbf16> to vector<104x144xbf16>
    %cst = arith.constant dense<0.000000e+00> : vector<104x32xf32>
    %3 = tpu.matmul %2, %0, %cst {dimension_numbers = #tpu.dot_dimension_numbers<[1], [0], [0], [1], [0, 0, 1, 1], [], []>} : vector<104x144xbf16>, vector<144x32xbf16>, vector<104x32xf32> -> vector<104x32xf32>
    %c1 = arith.constant 1 : index
    %c0_4 = arith.constant 0 : index
    %c0_5 = arith.constant 0 : index
    %4 = vector.load %arg1[%c1, %c0_4, %c0_5] : memref<4x104x144xbf16, #tpu.memory_space<vmem>>, vector<1x104x144xbf16>
    %5 = vector.shape_cast %4 : vector<1x104x144xbf16> to vector<104x144xbf16>
    %cst_6 = arith.constant dense<0.000000e+00> : vector<104x32xf32>
    %6 = tpu.matmul %5, %0, %cst_6 {dimension_numbers = #tpu.dot_dimension_numbers<[1], [0], [0], [1], [0, 0, 1, 1], [], []>} : vector<104x144xbf16>, vector<144x32xbf16>, vector<104x32xf32> -> vector<104x32xf32>
    %7 = arith.maximumf %3, %6 : vector<104x32xf32>
    %c2 = arith.constant 2 : index
    %c0_7 = arith.constant 0 : index
    %c0_8 = arith.constant 0 : index
    %8 = vector.load %arg1[%c2, %c0_7, %c0_8] : memref<4x104x144xbf16, #tpu.memory_space<vmem>>, vector<1x104x144xbf16>
    %9 = vector.shape_cast %8 : vector<1x104x144xbf16> to vector<104x144xbf16>
    %cst_9 = arith.constant dense<0.000000e+00> : vector<104x32xf32>
    %10 = tpu.matmul %9, %0, %cst_9 {dimension_numbers = #tpu.dot_dimension_numbers<[1], [0], [0], [1], [0, 0, 1, 1], [], []>} : vector<104x144xbf16>, vector<144x32xbf16>, vector<104x32xf32> -> vector<104x32xf32>
    %11 = arith.maximumf %7, %10 : vector<104x32xf32>
    %c3 = arith.constant 3 : index
    %c0_10 = arith.constant 0 : index
    %c0_11 = arith.constant 0 : index
    %12 = vector.load %arg1[%c3, %c0_10, %c0_11] : memref<4x104x144xbf16, #tpu.memory_space<vmem>>, vector<1x104x144xbf16>
    %13 = vector.shape_cast %12 : vector<1x104x144xbf16> to vector<104x144xbf16>
    %cst_12 = arith.constant dense<0.000000e+00> : vector<104x32xf32>
    %14 = tpu.matmul %13, %0, %cst_12 {dimension_numbers = #tpu.dot_dimension_numbers<[1], [0], [0], [1], [0, 0, 1, 1], [], []>} : vector<104x144xbf16>, vector<144x32xbf16>, vector<104x32xf32> -> vector<104x32xf32>
    %15 = arith.maximumf %11, %14 : vector<104x32xf32>
    %c0_13 = arith.constant 0 : index
    %c0_14 = arith.constant 0 : index
    %16 = vector.load %arg3[%c0_13, %c0_14] : memref<1x32xf32, #tpu.memory_space<vmem>>, vector<1x32xf32>
    %17 = vector.broadcast %16 : vector<1x32xf32> to vector<104x32xf32>
    %18 = arith.addf %15, %17 : vector<104x32xf32>
    %cst_15 = arith.constant 0.000000e+00 : f32
    %19 = vector.broadcast %cst_15 : f32 to vector<104x32xf32>
    %20 = arith.maximumf %18, %19 : vector<104x32xf32>
    %21 = arith.truncf %20 : vector<104x32xf32> to vector<104x32xbf16>
    %c0_16 = arith.constant 0 : index
    %c0_17 = arith.constant 0 : index
    %22 = vector.load %arg4[%c0_16, %c0_17] : memref<104x32xbf16, #tpu.memory_space<vmem>>, vector<104x32xbf16>
    tpu.vector_store %arg4[%c0_16, %c0_17], %21 {strides = array<i32>} : memref<104x32xbf16, #tpu.memory_space<vmem>>, vector<104x32xbf16>,
    return
  }
  func.func @transform_0(%arg0: i32) -> (i32, i32, i32) {
    %c0_i32 = arith.constant 0 : i32
    %c0_i32_0 = arith.constant 0 : i32
    %c0_i32_1 = arith.constant 0 : i32
    return %c0_i32, %arg0, %c0_i32_0 : i32, i32, i32
  }
  func.func @transform_1(%arg0: i32) -> (i32, i32) {
    %c0_i32 = arith.constant 0 : i32
    %c0_i32_0 = arith.constant 0 : i32
    %c0_i32_1 = arith.constant 0 : i32
    return %c0_i32, %c0_i32_0 : i32, i32
  }
  func.func @transform_2(%arg0: i32) -> (i32, i32) {
    %c0_i32 = arith.constant 0 : i32
    %c0_i32_0 = arith.constant 0 : i32
    %c0_i32_1 = arith.constant 0 : i32
    return %c0_i32, %c0_i32_0 : i32, i32
  }
  func.func @transform_3(%arg0: i32) -> (i32, i32) {
    %c0_i32 = arith.constant 0 : i32
    %c0_i32_0 = arith.constant 0 : i32
    return %arg0, %c0_i32 : i32, i32
  }
}

module attributes {stable_mosaic.version = 11 : i64} {
  func.func @_conv_relu_pool_kernel(%arg0: i32, %arg1: memref<4x24x288xbf16, #tpu.memory_space<vmem>>, %arg2: memref<288x64xbf16, #tpu.memory_space<vmem>>, %arg3: memref<1x64xf32, #tpu.memory_space<vmem>>, %arg4: memref<24x64xbf16, #tpu.memory_space<vmem>>) attributes {dimension_semantics = [#tpu.dimension_semantics<parallel>], iteration_bounds = array<i64: 1>, scalar_prefetch = 0 : i64, scratch_operands = 0 : i64, tpu.core_type = #tpu.core_type<tc>, window_params = [{transform_indices = @transform_0, window_bounds = array<i64: 4, 24, 288>}, {pipeline_mode = #tpu.pipeline_mode<synchronous>, transform_indices = @transform_1, window_bounds = array<i64: 288, 64>}, {pipeline_mode = #tpu.pipeline_mode<synchronous>, transform_indices = @transform_2, window_bounds = array<i64: 1, 64>}, {transform_indices = @transform_3, window_bounds = array<i64: 24, 64>}]} {
    %c0 = arith.constant 0 : index
    %c0_0 = arith.constant 0 : index
    %0 = vector.load %arg2[%c0, %c0_0] : memref<288x64xbf16, #tpu.memory_space<vmem>>, vector<288x64xbf16>
    %c0_1 = arith.constant 0 : index
    %c0_2 = arith.constant 0 : index
    %c0_3 = arith.constant 0 : index
    %1 = vector.load %arg1[%c0_1, %c0_2, %c0_3] : memref<4x24x288xbf16, #tpu.memory_space<vmem>>, vector<1x24x288xbf16>
    %2 = vector.shape_cast %1 : vector<1x24x288xbf16> to vector<24x288xbf16>
    %cst = arith.constant dense<0.000000e+00> : vector<24x64xf32>
    %3 = tpu.matmul %2, %0, %cst {dimension_numbers = #tpu.dot_dimension_numbers<[1], [0], [0], [1], [0, 0, 1, 1], [], []>} : vector<24x288xbf16>, vector<288x64xbf16>, vector<24x64xf32> -> vector<24x64xf32>
    %c1 = arith.constant 1 : index
    %c0_4 = arith.constant 0 : index
    %c0_5 = arith.constant 0 : index
    %4 = vector.load %arg1[%c1, %c0_4, %c0_5] : memref<4x24x288xbf16, #tpu.memory_space<vmem>>, vector<1x24x288xbf16>
    %5 = vector.shape_cast %4 : vector<1x24x288xbf16> to vector<24x288xbf16>
    %cst_6 = arith.constant dense<0.000000e+00> : vector<24x64xf32>
    %6 = tpu.matmul %5, %0, %cst_6 {dimension_numbers = #tpu.dot_dimension_numbers<[1], [0], [0], [1], [0, 0, 1, 1], [], []>} : vector<24x288xbf16>, vector<288x64xbf16>, vector<24x64xf32> -> vector<24x64xf32>
    %7 = arith.maximumf %3, %6 : vector<24x64xf32>
    %c2 = arith.constant 2 : index
    %c0_7 = arith.constant 0 : index
    %c0_8 = arith.constant 0 : index
    %8 = vector.load %arg1[%c2, %c0_7, %c0_8] : memref<4x24x288xbf16, #tpu.memory_space<vmem>>, vector<1x24x288xbf16>
    %9 = vector.shape_cast %8 : vector<1x24x288xbf16> to vector<24x288xbf16>
    %cst_9 = arith.constant dense<0.000000e+00> : vector<24x64xf32>
    %10 = tpu.matmul %9, %0, %cst_9 {dimension_numbers = #tpu.dot_dimension_numbers<[1], [0], [0], [1], [0, 0, 1, 1], [], []>} : vector<24x288xbf16>, vector<288x64xbf16>, vector<24x64xf32> -> vector<24x64xf32>
    %11 = arith.maximumf %7, %10 : vector<24x64xf32>
    %c3 = arith.constant 3 : index
    %c0_10 = arith.constant 0 : index
    %c0_11 = arith.constant 0 : index
    %12 = vector.load %arg1[%c3, %c0_10, %c0_11] : memref<4x24x288xbf16, #tpu.memory_space<vmem>>, vector<1x24x288xbf16>
    %13 = vector.shape_cast %12 : vector<1x24x288xbf16> to vector<24x288xbf16>
    %cst_12 = arith.constant dense<0.000000e+00> : vector<24x64xf32>
    %14 = tpu.matmul %13, %0, %cst_12 {dimension_numbers = #tpu.dot_dimension_numbers<[1], [0], [0], [1], [0, 0, 1, 1], [], []>} : vector<24x288xbf16>, vector<288x64xbf16>, vector<24x64xf32> -> vector<24x64xf32>
    %15 = arith.maximumf %11, %14 : vector<24x64xf32>
    %c0_13 = arith.constant 0 : index
    %c0_14 = arith.constant 0 : index
    %16 = vector.load %arg3[%c0_13, %c0_14] : memref<1x64xf32, #tpu.memory_space<vmem>>, vector<1x64xf32>
    %17 = vector.broadcast %16 : vector<1x64xf32> to vector<24x64xf32>
    %18 = arith.addf %15, %17 : vector<24x64xf32>
    %cst_15 = arith.constant 0.000000e+00 : f32
    %19 = vector.broadcast %cst_15 : f32 to vector<24x64xf32>
    %20 = arith.maximumf %18, %19 : vector<24x64xf32>
    %21 = arith.truncf %20 : vector<24x64xf32> to vector<24x64xbf16>
    %c0_16 = arith.constant 0 : index
    %c0_17 = arith.constant 0 : index
    %22 = vector.load %arg4[%c0_16, %c0_17] : memref<24x64xbf16, #tpu.memory_space<vmem>>, vector<24x64xbf16>
    tpu.vector_store %arg4[%c0_16, %c0_17], %21 {strides = array<i32>} : memref<24x64xbf16, #tpu.memory_space<vmem>>, vector<24x64xbf16>,
    return
  }
  func.func @transform_0(%arg0: i32) -> (i32, i32, i32) {
    %c0_i32 = arith.constant 0 : i32
    %c0_i32_0 = arith.constant 0 : i32
    %c0_i32_1 = arith.constant 0 : i32
    return %c0_i32, %arg0, %c0_i32_0 : i32, i32, i32
  }
  func.func @transform_1(%arg0: i32) -> (i32, i32) {
    %c0_i32 = arith.constant 0 : i32
    %c0_i32_0 = arith.constant 0 : i32
    %c0_i32_1 = arith.constant 0 : i32
    return %c0_i32, %c0_i32_0 : i32, i32
  }
  func.func @transform_2(%arg0: i32) -> (i32, i32) {
    %c0_i32 = arith.constant 0 : i32
    %c0_i32_0 = arith.constant 0 : i32
    %c0_i32_1 = arith.constant 0 : i32
    return %c0_i32, %c0_i32_0 : i32, i32
  }
  func.func @transform_3(%arg0: i32) -> (i32, i32) {
    %c0_i32 = arith.constant 0 : i32
    %c0_i32_0 = arith.constant 0 : i32
    return %arg0, %c0_i32 : i32, i32
  }
}

module attributes {stable_mosaic.version = 11 : i64} {
  func.func @_matmul_bias_kernel(%arg0: i32, %arg1: memref<8x576xbf16, #tpu.memory_space<vmem>>, %arg2: memref<576x10xbf16, #tpu.memory_space<vmem>>, %arg3: memref<1x10xf32, #tpu.memory_space<vmem>>, %arg4: memref<8x10xf32, #tpu.memory_space<vmem>>) attributes {dimension_semantics = [#tpu.dimension_semantics<parallel>], iteration_bounds = array<i64: 1>, scalar_prefetch = 0 : i64, scratch_operands = 0 : i64, tpu.core_type = #tpu.core_type<tc>, window_params = [{transform_indices = @transform_0, window_bounds = array<i64: 8, 576>}, {pipeline_mode = #tpu.pipeline_mode<synchronous>, transform_indices = @transform_1, window_bounds = array<i64: 576, 10>}, {pipeline_mode = #tpu.pipeline_mode<synchronous>, transform_indices = @transform_2, window_bounds = array<i64: 1, 10>}, {transform_indices = @transform_3, window_bounds = array<i64: 8, 10>}]} {
    %c0 = arith.constant 0 : index
    %c0_0 = arith.constant 0 : index
    %0 = vector.load %arg1[%c0, %c0_0] : memref<8x576xbf16, #tpu.memory_space<vmem>>, vector<8x576xbf16>
    %c0_1 = arith.constant 0 : index
    %c0_2 = arith.constant 0 : index
    %1 = vector.load %arg2[%c0_1, %c0_2] : memref<576x10xbf16, #tpu.memory_space<vmem>>, vector<576x10xbf16>
    %cst = arith.constant dense<0.000000e+00> : vector<8x10xf32>
    %2 = tpu.matmul %0, %1, %cst {dimension_numbers = #tpu.dot_dimension_numbers<[1], [0], [0], [1], [0, 0, 1, 1], [], []>} : vector<8x576xbf16>, vector<576x10xbf16>, vector<8x10xf32> -> vector<8x10xf32>
    %c0_3 = arith.constant 0 : index
    %c0_4 = arith.constant 0 : index
    %3 = vector.load %arg3[%c0_3, %c0_4] : memref<1x10xf32, #tpu.memory_space<vmem>>, vector<1x10xf32>
    %4 = vector.broadcast %3 : vector<1x10xf32> to vector<8x10xf32>
    %5 = arith.addf %2, %4 : vector<8x10xf32>
    %c0_5 = arith.constant 0 : index
    %c0_6 = arith.constant 0 : index
    %6 = vector.load %arg4[%c0_5, %c0_6] : memref<8x10xf32, #tpu.memory_space<vmem>>, vector<8x10xf32>
    tpu.vector_store %arg4[%c0_5, %c0_6], %5 {strides = array<i32>} : memref<8x10xf32, #tpu.memory_space<vmem>>, vector<8x10xf32>,
    return
  }
  func.func @transform_0(%arg0: i32) -> (i32, i32) {
    %c0_i32 = arith.constant 0 : i32
    %c0_i32_0 = arith.constant 0 : i32
    return %arg0, %c0_i32 : i32, i32
  }
  func.func @transform_1(%arg0: i32) -> (i32, i32) {
    %c0_i32 = arith.constant 0 : i32
    %c0_i32_0 = arith.constant 0 : i32
    %c0_i32_1 = arith.constant 0 : i32
    return %c0_i32, %c0_i32_0 : i32, i32
  }
  func.func @transform_2(%arg0: i32) -> (i32, i32) {
    %c0_i32 = arith.constant 0 : i32
    %c0_i32_0 = arith.constant 0 : i32
    %c0_i32_1 = arith.constant 0 : i32
    return %c0_i32, %c0_i32_0 : i32, i32
  }
  func.func @transform_3(%arg0: i32) -> (i32, i32) {
    %c0_i32 = arith.constant 0 : i32
    %c0_i32_0 = arith.constant 0 : i32
    return %arg0, %c0_i32 : i32, i32
  }
}

</mosaic_0001>

<bundles_post_ra>
// kernel: mnist_convnet_forward.4
= control target key start
LH: loop header
LB: loop body
LE: loop exit
PB: predicated region body
PF: predicated region fallthrough
CT: control target
= control target key end

     0   :  { %vm270_vm0 = vcmask 1043456   ;;  %vm271_vm1 = vcmask 1044480   ;;  %v2640_v2 = vmov 65535   ;;  %vm194_vm2 = vcmask 72704   ;;  %s3322_s1 = inlined_call_operand.vmem [shape: bf16[9,16], index: 1, kind: input, shape index: {}]   ;;  %s3323_s0 = inlined_call_operand.vmem [shape: bf16[4,392,9], index: 0, kind: input, shape index: {}]   ;;  %s3324_s2 = inlined_call_operand.vmem [shape: f32[1,16], index: 2, kind: input, shape index: {}]   ;;  %s3325_s3 = inlined_call_operand.vmem [shape: bf16[392,16], index: 3, kind: output, shape index: {}]  }
   0x1   :  { %v2003_v0 = vld [vmem:[%s3322_s1] sm:$0xf]  ;;  %v2540_v1 = vld [vmem:[%s3322_s1] sm:$0x10]  ;;  %v272_v3 = vsel %vm270_vm0, 4294967295, %v2640_v2  ;;  %v2589_v9 = vld [vmem:[%s3323_s0 + $0x188] sm:$0xff] }
   0x2   :  { %v2004_v4 = vor.u32 %v2540_v1, %v2003_v0  ;;  %v273_v5 = vsel %vm271_vm1, %v272_v3, 0  ;;  %v2541_v7 = vld [vmem:[%s3323_s0] sm:$0xff]  ;;  %v2613_v10 = vld [vmem:[%s3323_s0 + $0x24c] sm:$0xff]  ;;  %v2614_v14 = vld [vmem:[%s3323_s0 + $0x254] sm:$0xff]  ;;  %vm1851_vm3 = vcmask 125952  }
   0x3   :  { %v2565_v8 = vld [vmem:[%s3323_s0 + $0xc4] sm:$0xff]  ;;  %v2566_v12 = vld [vmem:[%s3323_s0 + $0xcc] sm:$0xff]  ;;  %v2567_v16 = vld [vmem:[%s3323_s0 + $0xd4] sm:$0xff] }
   0x4   :  { %v275_v6 = vand.u32 %v2004_v4, %v273_v5  ;;  %v2542_v11 = vld [vmem:[%s3323_s0 + $0x8] sm:$0xff]  ;;  %v2590_v13 = vld [vmem:[%s3323_s0 + $0x190] sm:$0xff]  ;;  %v2591_v17 = vld [vmem:[%s3323_s0 + $0x198] sm:$0xff] }
   0x5   :  { %v2543_v15 = vld [vmem:[%s3323_s0 + $0x10] sm:$0xff]  ;;  %v2615_v18 = vld [vmem:[%s3323_s0 + $0x25c] sm:$0xff]  ;;  %v2616_v22 = vld [vmem:[%s3323_s0 + $0x264] sm:$0xff] }
   0x6   :  { %284 = vmatpush.bf16.msra.mxu0 %v275_v6  ;;  %665 = vmatpush.bf16.msra.mxu1 %v275_v6  ;;  %v2544_v19 = vld [vmem:[%s3323_s0 + $0x18] sm:$0xff]  ;;  %v2592_v21 = vld [vmem:[%s3323_s0 + $0x1a0] sm:$0xff]  ;;  %v2593_v25 = vld [vmem:[%s3323_s0 + $0x1a8] sm:$0xff] }
   0x7   :  { %1095 = vmatpush.bf16.msra.mxu2 %v275_v6  ;;  %1525 = vmatpush.bf16.msra.mxu3 %v275_v6  ;;  %v2568_v20 = vld [vmem:[%s3323_s0 + $0xdc] sm:$0xff]  ;;  %v2569_v24 = vld [vmem:[%s3323_s0 + $0xe4] sm:$0xff]  ;;  %v2617_v26 = vld [vmem:[%s3323_s0 + $0x26c] sm:$0xff] }
   0x8   :  { %v2545_v23 = vld [vmem:[%s3323_s0 + $0x20] sm:$0xff]  ;;  %v2546_v27 = vld [vmem:[%s3323_s0 + $0x28] sm:$0xff]  ;;  %v2594_v29 = vld [vmem:[%s3323_s0 + $0x1b0] sm:$0xff] }
   0x9   :  { %2005 = vmatmul.msk.bf16.vlgmr.msra.gmra.mxu0 %vm194_vm2, %v2541_v7  ;;  %2175 = vmatmul.msk.bf16.vlgmr.msra.gmra.mxu1 %vm194_vm2, %v2565_v8  ;;  %v2570_v28 = vld [vmem:[%s3323_s0 + $0xec] sm:$0xff]  ;;  %v2618_v30 = vld [vmem:[%s3323_s0 + $0x274] sm:$0xff]  ;;  %v2619_v34 = vld [vmem:[%s3323_s0 + $0x27c] sm:$0xff] }
   0xa   :  { %2345 = vmatmul.msk.bf16.vlgmr.msra.gmra.mxu2 %vm194_vm2, %v2589_v9  ;;  %2515 = vmatmul.msk.bf16.vlgmr.msra.gmra.mxu3 %vm194_vm2, %v2613_v10  ;;  %v2547_v31 = vld [vmem:[%s3323_s0 + $0x30] sm:$0xff]  ;;  %v2595_v33 = vld [vmem:[%s3323_s0 + $0x1b8] sm:$0xff]  ;;  %v2596_v37 = vld [vmem:[%s3323_s0 + $0x1c0] sm:$0xff] }
   0xb   :  { %v2571_v32 = vld [vmem:[%s3323_s0 + $0xf4] sm:$0xff]  ;;  %v2572_v36 = vld [vmem:[%s3323_s0 + $0xfc] sm:$0xff]  ;;  %v2620_v38 = vld [vmem:[%s3323_s0 + $0x284] sm:$0xff] }
   0xc   :  { %v2548_v35 = vld [vmem:[%s3323_s0 + $0x38] sm:$0xff]  ;;  %v2549_v39 = vld [vmem:[%s3323_s0 + $0x40] sm:$0xff]  ;;  %v2597_v43 = vld [vmem:[%s3323_s0 + $0x1c8] sm:$0xff] }
   0xd   :  { %v2573_v40 = vld [vmem:[%s3323_s0 + $0x104] sm:$0xff]  ;;  %v2621_v44 = vld [vmem:[%s3323_s0 + $0x28c] sm:$0xff]  ;;  %v2814_v49 = vld [vmem:[%s3324_s2] ss:$0 sm:$0xff] }
   0xe   :  { %v2550_v58 = vld [vmem:[%s3323_s0 + $0x48] sm:$0xff]  ;;  %v2598_v0 = vld [vmem:[%s3323_s0 + $0x1d0] sm:$0xff] }
   0xf   :  { %v2574_v59 = vld [vmem:[%s3323_s0 + $0x10c] sm:$0xff]  ;;  %v2622_v1 = vld [vmem:[%s3323_s0 + $0x294] sm:$0xff] }
  0x19   :  { %2006 = vmatmul.msk.bf16.gmra.mxu0 %vm194_vm2, %v2542_v11  ;;  %2176 = vmatmul.msk.bf16.gmra.mxu1 %vm194_vm2, %v2566_v12 }
  0x1a   :  { %2346 = vmatmul.msk.bf16.gmra.mxu2 %vm194_vm2, %v2590_v13  ;;  %2516 = vmatmul.msk.bf16.gmra.mxu3 %vm194_vm2, %v2614_v14 }
  0x29   :  { %2007 = vmatmul.msk.bf16.gmra.mxu0 %vm194_vm2, %v2543_v15  ;;  %2177 = vmatmul.msk.bf16.gmra.mxu1 %vm194_vm2, %v2567_v16 }
  0x2a   :  { %2347 = vmatmul.msk.bf16.gmra.mxu2 %vm194_vm2, %v2591_v17  ;;  %2517 = vmatmul.msk.bf16.gmra.mxu3 %vm194_vm2, %v2615_v18  ;;  %v2551_v18 = vld [vmem:[%s3323_s0 + $0x50] sm:$0xff] }
  0x39   :  { %2008 = vmatmul.msk.bf16.gmra.mxu0 %vm194_vm2, %v2544_v19  ;;  %2178 = vmatmul.msk.bf16.gmra.mxu1 %vm194_vm2, %v2568_v20  ;;  %v2575_v19 = vld [vmem:[%s3323_s0 + $0x114] sm:$0xff] }
  0x3a   :  { %2348 = vmatmul.msk.bf16.gmra.mxu2 %vm194_vm2, %v2592_v21  ;;  %2518 = vmatmul.msk.bf16.gmra.mxu3 %vm194_vm2, %v2616_v22 }
  0x49   :  { %2009 = vmatmul.msk.bf16.gmra.mxu0 %vm194_vm2, %v2545_v23  ;;  %2179 = vmatmul.msk.bf16.gmra.mxu1 %vm194_vm2, %v2569_v24  ;;  %v2599_v24 = vld [vmem:[%s3323_s0 + $0x1d8] sm:$0xff] }
  0x4a   :  { %2349 = vmatmul.msk.bf16.gmra.mxu2 %vm194_vm2, %v2593_v25  ;;  %2519 = vmatmul.msk.bf16.gmra.mxu3 %vm194_vm2, %v2617_v26  ;;  %v2623_v25 = vld [vmem:[%s3323_s0 + $0x29c] sm:$0xff] }
  0x59   :  { %2010 = vmatmul.msk.bf16.gmra.mxu0 %vm194_vm2, %v2546_v27  ;;  %2180 = vmatmul.msk.bf16.gmra.mxu1 %vm194_vm2, %v2570_v28 }
  0x5a   :  { %2350 = vmatmul.msk.bf16.gmra.mxu2 %vm194_vm2, %v2594_v29  ;;  %2520 = vmatmul.msk.bf16.gmra.mxu3 %vm194_vm2, %v2618_v30 }
  0x69   :  { %2011 = vmatmul.msk.bf16.gmra.mxu0 %vm194_vm2, %v2547_v31  ;;  %2181 = vmatmul.msk.bf16.gmra.mxu1 %vm194_vm2, %v2571_v32 }
  0x6a   :  { %2351 = vmatmul.msk.bf16.gmra.mxu2 %vm194_vm2, %v2595_v33  ;;  %2521 = vmatmul.msk.bf16.gmra.mxu3 %vm194_vm2, %v2619_v34 }
  0x79   :  { %2012 = vmatmul.msk.bf16.gmra.mxu0 %vm194_vm2, %v2548_v35  ;;  %2182 = vmatmul.msk.bf16.gmra.mxu1 %vm194_vm2, %v2572_v36 }
  0x7a   :  { %2352 = vmatmul.msk.bf16.gmra.mxu2 %vm194_vm2, %v2596_v37  ;;  %2522 = vmatmul.msk.bf16.gmra.mxu3 %vm194_vm2, %v2620_v38 }
  0x86   :  { %v286_v41 = vpop.f32.mrf.mxu0  ;;  %v667_v42 = vpop.f32.mrf.mxu1 }
  0x87   :  { %v791_v45 = vmax.f32 %v286_v41, %v667_v42  ;;  %v2552_v42 = vld [vmem:[%s3323_s0 + $0x58] sm:$0xff] }
  0x89   :  { %2013 = vmatmul.msk.bf16.gmra.mxu0 %vm194_vm2, %v2549_v39  ;;  %2183 = vmatmul.msk.bf16.gmra.mxu1 %vm194_vm2, %v2573_v40 }
  0x8a   :  { %2353 = vmatmul.msk.bf16.gmra.mxu2 %vm194_vm2, %v2597_v43  ;;  %2523 = vmatmul.msk.bf16.gmra.mxu3 %vm194_vm2, %v2621_v44  ;;  %v2576_v43 = vld [vmem:[%s3323_s0 + $0x11c] sm:$0xff] }
  0x8d   :  { %v1097_v46 = vpop.f32.mrf.mxu2  ;;  %v1527_v47 = vpop.f32.mrf.mxu3 }
  0x8e   :  { %v1221_v48 = vmax.f32 %v791_v45, %v1097_v46  ;;  %v288_v50 = vpop.f32.mrf.mxu0  ;;  %v669_v51 = vpop.f32.mrf.mxu1 }
  0x8f   :  { %v792_v55 = vmax.f32 %v288_v50, %v669_v51  ;;  %v2624_v50 = vld [vmem:[%s3323_s0 + $0x2a4] sm:$0xff] }
  0x90   :  { %v1651_v52 = vmax.f32 %v1221_v48, %v1527_v47  ;;  %v2600_v48 = vld [vmem:[%s3323_s0 + $0x1e0] sm:$0xff] }
  0x92   :  { %v1704_v53 = vadd.f32 %v2814_v49, %v1651_v52 }
  0x94   :  { %v1753_v54 = vmax.f32 %v1704_v53, 0.0 }
  0x95   :  { %v1099_v56 = vpop.f32.mrf.mxu2  ;;  %v1529_v57 = vpop.f32.mrf.mxu3 }
  0x96   :  { %v1802_v60 = vpack.c.bf16 %v1753_v54, %v1753_v54  ;;  %v1222_v61 = vmax.f32 %v792_v55, %v1099_v56  ;;  %v291_v62 = vpop.f32.mrf.mxu0  ;;  %v672_v63 = vpop.f32.mrf.mxu1 }
  0x97   :  { %v793_v4 = vmax.f32 %v291_v62, %v672_v63 }
  0x98   :  { %1852 = vst.msk [vmem:[%s3325_s3] sm:$0xf] %vm1851_vm3, %v1802_v60  ;;  %v1652_v2 = vmax.f32 %v1222_v61, %v1529_v57 }
  0x99   :  { %2014 = vmatmul.msk.bf16.gmra.mxu0 %vm194_vm2, %v2550_v58  ;;  %2184 = vmatmul.msk.bf16.gmra.mxu1 %vm194_vm2, %v2574_v59 }
  0x9a   :  { %v1705_v3 = vadd.f32 %v2814_v49, %v1652_v2  ;;  %2354 = vmatmul.msk.bf16.gmra.mxu2 %vm194_vm2, %v2598_v0  ;;  %2524 = vmatmul.msk.bf16.gmra.mxu3 %vm194_vm2, %v2622_v1 }
  0x9c   :  { %v1754_v5 = vmax.f32 %v1705_v3, 0.0  ;;  %v2553_v3 = vld [vmem:[%s3323_s0 + $0x60] sm:$0xff] }
  0x9d   :  { %v1102_v6 = vpop.f32.mrf.mxu2  ;;  %v1532_v7 = vpop.f32.mrf.mxu3 }
  0x9e   :  { %v1803_v8 = vpack.c.bf16 %v1754_v5, %v1754_v5  ;;  %v1223_v9 = vmax.f32 %v793_v4, %v1102_v6  ;;  %v293_v10 = vpop.f32.mrf.mxu0  ;;  %v674_v11 = vpop.f32.mrf.mxu1  ;;  %v2577_v4 = vld [vmem:[%s3323_s0 + $0x124] sm:$0xff] }
  0x9f   :  { %v794_v15 = vmax.f32 %v293_v10, %v674_v11  ;;  %v2625_v10 = vld [vmem:[%s3323_s0 + $0x2ac] sm:$0xff] }
  0xa0   :  { %1853 = vst.msk [vmem:[%s3325_s3 + $0x4] sm:$0xf] %vm1851_vm3, %v1803_v8  ;;  %v1653_v12 = vmax.f32 %v1223_v9, %v1532_v7  ;;  %v2601_v9 = vld [vmem:[%s3323_s0 + $0x1e8] sm:$0xff] }
  0xa2   :  { %v1706_v13 = vadd.f32 %v2814_v49, %v1653_v12 }
  0xa4   :  { %v1755_v14 = vmax.f32 %v1706_v13, 0.0 }
  0xa5   :  { %v1104_v16 = vpop.f32.mrf.mxu2  ;;  %v1534_v17 = vpop.f32.mrf.mxu3 }
  0xa6   :  { %v1804_v20 = vpack.c.bf16 %v1755_v14, %v1755_v14  ;;  %v1224_v21 = vmax.f32 %v794_v15, %v1104_v16  ;;  %v296_v22 = vpop.f32.mrf.mxu0  ;;  %v677_v23 = vpop.f32.mrf.mxu1 }
  0xa7   :  { %v795_v28 = vmax.f32 %v296_v22, %v677_v23 }
  0xa8   :  { %1854 = vst.msk [vmem:[%s3325_s3 + $0x8] sm:$0xf] %vm1851_vm3, %v1804_v20  ;;  %v1654_v26 = vmax.f32 %v1224_v21, %v1534_v17 }
  0xa9   :  { %2015 = vmatmul.msk.bf16.gmra.mxu0 %vm194_vm2, %v2551_v18  ;;  %2185 = vmatmul.msk.bf16.gmra.mxu1 %vm194_vm2, %v2575_v19 }
  0xaa   :  { %v1707_v27 = vadd.f32 %v2814_v49, %v1654_v26  ;;  %2355 = vmatmul.msk.bf16.gmra.mxu2 %vm194_vm2, %v2599_v24  ;;  %2525 = vmatmul.msk.bf16.gmra.mxu3 %vm194_vm2, %v2623_v25 }
  0xac   :  { %v1756_v29 = vmax.f32 %v1707_v27, 0.0  ;;  %v2554_v27 = vld [vmem:[%s3323_s0 + $0x68] sm:$0xff] }
  0xad   :  { %v1107_v30 = vpop.f32.mrf.mxu2  ;;  %v1537_v31 = vpop.f32.mrf.mxu3 }
  0xae   :  { %v1805_v32 = vpack.c.bf16 %v1756_v29, %v1756_v29  ;;  %v1225_v33 = vmax.f32 %v795_v28, %v1107_v30  ;;  %v298_v34 = vpop.f32.mrf.mxu0  ;;  %v679_v35 = vpop.f32.mrf.mxu1  ;;  %v2578_v28 = vld [vmem:[%s3323_s0 + $0x12c] sm:$0xff] }
  0xaf   :  { %v796_v39 = vmax.f32 %v298_v34, %v679_v35  ;;  %v2626_v34 = vld [vmem:[%s3323_s0 + $0x2b4] sm:$0xff] }
  0xb0   :  { %1855 = vst.msk [vmem:[%s3325_s3 + $0xc] sm:$0xf] %vm1851_vm3, %v1805_v32  ;;  %v1655_v36 = vmax.f32 %v1225_v33, %v1537_v31  ;;  %v2602_v33 = vld [vmem:[%s3323_s0 + $0x1f0] sm:$0xff] }
  0xb2   :  { %v1708_v37 = vadd.f32 %v2814_v49, %v1655_v36 }
  0xb4   :  { %v1757_v38 = vmax.f32 %v1708_v37, 0.0 }
  0xb5   :  { %v1109_v40 = vpop.f32.mrf.mxu2  ;;  %v1539_v41 = vpop.f32.mrf.mxu3 }
  0xb6   :  { %v1806_v44 = vpack.c.bf16 %v1757_v38, %v1757_v38  ;;  %v1226_v45 = vmax.f32 %v796_v39, %v1109_v40  ;;  %v301_v46 = vpop.f32.mrf.mxu0  ;;  %v682_v47 = vpop.f32.mrf.mxu1 }
  0xb7   :  { %v797_v53 = vmax.f32 %v301_v46, %v682_v47 }
  0xb8   :  { %1856 = vst.msk [vmem:[%s3325_s3 + $0x10] sm:$0xf] %vm1851_vm3, %v1806_v44  ;;  %v1656_v51 = vmax.f32 %v1226_v45, %v1539_v41 }
  0xb9   :  { %2016 = vmatmul.msk.bf16.gmra.mxu0 %vm194_vm2, %v2552_v42  ;;  %2186 = vmatmul.msk.bf16.gmra.mxu1 %vm194_vm2, %v2576_v43 }
  0xba   :  { %v1709_v52 = vadd.f32 %v2814_v49, %v1656_v51  ;;  %2356 = vmatmul.msk.bf16.gmra.mxu2 %vm194_vm2, %v2600_v48  ;;  %2526 = vmatmul.msk.bf16.gmra.mxu3 %vm194_vm2, %v2624_v50 }
  0xbc   :  { %v1758_v54 = vmax.f32 %v1709_v52, 0.0  ;;  %v2555_v52 = vld [vmem:[%s3323_s0 + $0x70] sm:$0xff] }
  0xbd   :  { %v1112_v55 = vpop.f32.mrf.mxu2  ;;  %v1542_v56 = vpop.f32.mrf.mxu3 }
  0xbe   :  { %v1807_v57 = vpack.c.bf16 %v1758_v54, %v1758_v54  ;;  %v1227_v58 = vmax.f32 %v797_v53, %v1112_v55  ;;  %v303_v59 = vpop.f32.mrf.mxu0  ;;  %v684_v60 = vpop.f32.mrf.mxu1  ;;  %v2579_v53 = vld [vmem:[%s3323_s0 + $0x134] sm:$0xff] }
  0xbf   :  { %v798_v0 = vmax.f32 %v303_v59, %v684_v60  ;;  %v2627_v59 = vld [vmem:[%s3323_s0 + $0x2bc] sm:$0xff] }
  0xc0   :  { %1857 = vst.msk [vmem:[%s3325_s3 + $0x14] sm:$0xf] %vm1851_vm3, %v1807_v57  ;;  %v1657_v61 = vmax.f32 %v1227_v58, %v1542_v56  ;;  %v2603_v58 = vld [vmem:[%s3323_s0 + $0x1f8] sm:$0xff] }
  0xc2   :  { %v1710_v62 = vadd.f32 %v2814_v49, %v1657_v61 }
  0xc4   :  { %v1759_v63 = vmax.f32 %v1710_v62, 0.0 }
  0xc5   :  { %v1114_v1 = vpop.f32.mrf.mxu2  ;;  %v1544_v2 = vpop.f32.mrf.mxu3 }
  0xc6   :  { %v1808_v5 = vpack.c.bf16 %v1759_v63, %v1759_v63  ;;  %v1228_v6 = vmax.f32 %v798_v0, %v1114_v1  ;;  %v306_v7 = vpop.f32.mrf.mxu0  ;;  %v687_v8 = vpop.f32.mrf.mxu1 }
  0xc7   :  { %v799_v13 = vmax.f32 %v306_v7, %v687_v8 }
  0xc8   :  { %1858 = vst.msk [vmem:[%s3325_s3 + $0x18] sm:$0xf] %vm1851_vm3, %v1808_v5  ;;  %v1658_v11 = vmax.f32 %v1228_v6, %v1544_v2 }
  0xc9   :  { %2017 = vmatmul.msk.bf16.gmra.mxu0 %vm194_vm2, %v2553_v3  ;;  %2187 = vmatmul.msk.bf16.gmra.mxu1 %vm194_vm2, %v2577_v4 }
  0xca   :  { %v1711_v12 = vadd.f32 %v2814_v49, %v1658_v11  ;;  %2357 = vmatmul.msk.bf16.gmra.mxu2 %vm194_vm2, %v2601_v9  ;;  %2527 = vmatmul.msk.bf16.gmra.mxu3 %vm194_vm2, %v2625_v10 }
  0xcc   :  { %v1760_v14 = vmax.f32 %v1711_v12, 0.0  ;;  %v2556_v12 = vld [vmem:[%s3323_s0 + $0x78] sm:$0xff] }
  0xcd   :  { %v1117_v15 = vpop.f32.mrf.mxu2  ;;  %v1547_v16 = vpop.f32.mrf.mxu3 }
  0xce   :  { %v1809_v17 = vpack.c.bf16 %v1760_v14, %v1760_v14  ;;  %v1229_v18 = vmax.f32 %v799_v13, %v1117_v15  ;;  %v308_v19 = vpop.f32.mrf.mxu0  ;;  %v689_v20 = vpop.f32.mrf.mxu1  ;;  %v2580_v13 = vld [vmem:[%s3323_s0 + $0x13c] sm:$0xff] }
  0xcf   :  { %v800_v24 = vmax.f32 %v308_v19, %v689_v20  ;;  %v2628_v19 = vld [vmem:[%s3323_s0 + $0x2c4] sm:$0xff] }
  0xd0   :  { %1859 = vst.msk [vmem:[%s3325_s3 + $0x1c] sm:$0xf] %vm1851_vm3, %v1809_v17  ;;  %v1659_v21 = vmax.f32 %v1229_v18, %v1547_v16  ;;  %v2604_v18 = vld [vmem:[%s3323_s0 + $0x200] sm:$0xff] }
  0xd2   :  { %v1712_v22 = vadd.f32 %v2814_v49, %v1659_v21 }
  0xd4   :  { %v1761_v23 = vmax.f32 %v1712_v22, 0.0 }
  0xd5   :  { %v1119_v25 = vpop.f32.mrf.mxu2  ;;  %v1549_v26 = vpop.f32.mrf.mxu3 }
  0xd6   :  { %v1810_v29 = vpack.c.bf16 %v1761_v23, %v1761_v23  ;;  %v1230_v30 = vmax.f32 %v800_v24, %v1119_v25  ;;  %v311_v31 = vpop.f32.mrf.mxu0  ;;  %v692_v32 = vpop.f32.mrf.mxu1 }
  0xd7   :  { %v801_v37 = vmax.f32 %v311_v31, %v692_v32 }
  0xd8   :  { %1860 = vst.msk [vmem:[%s3325_s3 + $0x20] sm:$0xf] %vm1851_vm3, %v1810_v29  ;;  %v1660_v35 = vmax.f32 %v1230_v30, %v1549_v26 }
  0xd9   :  { %2018 = vmatmul.msk.bf16.gmra.mxu0 %vm194_vm2, %v2554_v27  ;;  %2188 = vmatmul.msk.bf16.gmra.mxu1 %vm194_vm2, %v2578_v28 }
  0xda   :  { %v1713_v36 = vadd.f32 %v2814_v49, %v1660_v35  ;;  %2358 = vmatmul.msk.bf16.gmra.mxu2 %vm194_vm2, %v2602_v33  ;;  %2528 = vmatmul.msk.bf16.gmra.mxu3 %vm194_vm2, %v2626_v34 }
  0xdc   :  { %v1762_v38 = vmax.f32 %v1713_v36, 0.0  ;;  %v2557_v36 = vld [vmem:[%s3323_s0 + $0x80] sm:$0xff] }
  0xdd   :  { %v1122_v39 = vpop.f32.mrf.mxu2  ;;  %v1552_v40 = vpop.f32.mrf.mxu3 }
  0xde   :  { %v1811_v41 = vpack.c.bf16 %v1762_v38, %v1762_v38  ;;  %v1231_v42 = vmax.f32 %v801_v37, %v1122_v39  ;;  %v313_v43 = vpop.f32.mrf.mxu0  ;;  %v694_v44 = vpop.f32.mrf.mxu1  ;;  %v2581_v37 = vld [vmem:[%s3323_s0 + $0x144] sm:$0xff] }
  0xdf   :  { %v802_v48 = vmax.f32 %v313_v43, %v694_v44  ;;  %v2629_v43 = vld [vmem:[%s3323_s0 + $0x2cc] sm:$0xff] }
  0xe0   :  { %1861 = vst.msk [vmem:[%s3325_s3 + $0x24] sm:$0xf] %vm1851_vm3, %v1811_v41  ;;  %v1661_v45 = vmax.f32 %v1231_v42, %v1552_v40  ;;  %v2605_v42 = vld [vmem:[%s3323_s0 + $0x208] sm:$0xff] }
  0xe2   :  { %v1714_v46 = vadd.f32 %v2814_v49, %v1661_v45 }
  0xe4   :  { %v1763_v47 = vmax.f32 %v1714_v46, 0.0 }
  0xe5   :  { %v1124_v50 = vpop.f32.mrf.mxu2  ;;  %v1554_v51 = vpop.f32.mrf.mxu3 }
  0xe6   :  { %v1812_v54 = vpack.c.bf16 %v1763_v47, %v1763_v47  ;;  %v1232_v55 = vmax.f32 %v802_v48, %v1124_v50  ;;  %v316_v56 = vpop.f32.mrf.mxu0  ;;  %v697_v57 = vpop.f32.mrf.mxu1 }
  0xe7   :  { %v803_v62 = vmax.f32 %v316_v56, %v697_v57 }
  0xe8   :  { %1862 = vst.msk [vmem:[%s3325_s3 + $0x28] sm:$0xf] %vm1851_vm3, %v1812_v54  ;;  %v1662_v60 = vmax.f32 %v1232_v55, %v1554_v51 }
  0xe9   :  { %2019 = vmatmul.msk.bf16.gmra.mxu0 %vm194_vm2, %v2555_v52  ;;  %2189 = vmatmul.msk.bf16.gmra.mxu1 %vm194_vm2, %v2579_v53 }
  0xea   :  { %v1715_v61 = vadd.f32 %v2814_v49, %v1662_v60  ;;  %2359 = vmatmul.msk.bf16.gmra.mxu2 %vm194_vm2, %v2603_v58  ;;  %2529 = vmatmul.msk.bf16.gmra.mxu3 %vm194_vm2, %v2627_v59 }
  0xec   :  { %v1764_v63 = vmax.f32 %v1715_v61, 0.0  ;;  %v2558_v61 = vld [vmem:[%s3323_s0 + $0x88] sm:$0xff] }
  0xed   :  { %v1127_v0 = vpop.f32.mrf.mxu2  ;;  %v1557_v1 = vpop.f32.mrf.mxu3 }
  0xee   :  { %v1813_v2 = vpack.c.bf16 %v1764_v63, %v1764_v63  ;;  %v1233_v3 = vmax.f32 %v803_v62, %v1127_v0  ;;  %v318_v4 = vpop.f32.mrf.mxu0  ;;  %v699_v5 = vpop.f32.mrf.mxu1  ;;  %v2582_v62 = vld [vmem:[%s3323_s0 + $0x14c] sm:$0xff] }
  0xef   :  { %v804_v9 = vmax.f32 %v318_v4, %v699_v5  ;;  %v2630_v4 = vld [vmem:[%s3323_s0 + $0x2d4] sm:$0xff] }
  0xf0   :  { %1863 = vst.msk [vmem:[%s3325_s3 + $0x2c] sm:$0xf] %vm1851_vm3, %v1813_v2  ;;  %v1663_v6 = vmax.f32 %v1233_v3, %v1557_v1  ;;  %v2606_v3 = vld [vmem:[%s3323_s0 + $0x210] sm:$0xff] }
  0xf2   :  { %v1716_v7 = vadd.f32 %v2814_v49, %v1663_v6 }
  0xf4   :  { %v1765_v8 = vmax.f32 %v1716_v7, 0.0 }
  0xf5   :  { %v1129_v10 = vpop.f32.mrf.mxu2  ;;  %v1559_v11 = vpop.f32.mrf.mxu3 }
  0xf6   :  { %v1814_v14 = vpack.c.bf16 %v1765_v8, %v1765_v8  ;;  %v1234_v15 = vmax.f32 %v804_v9, %v1129_v10  ;;  %v321_v16 = vpop.f32.mrf.mxu0  ;;  %v702_v17 = vpop.f32.mrf.mxu1 }
  0xf7   :  { %v805_v22 = vmax.f32 %v321_v16, %v702_v17 }
  0xf8   :  { %1864 = vst.msk [vmem:[%s3325_s3 + $0x30] sm:$0xf] %vm1851_vm3, %v1814_v14  ;;  %v1664_v20 = vmax.f32 %v1234_v15, %v1559_v11 }
  0xf9   :  { %2020 = vmatmul.msk.bf16.gmra.mxu0 %vm194_vm2, %v2556_v12  ;;  %2190 = vmatmul.msk.bf16.gmra.mxu1 %vm194_vm2, %v2580_v13 }
  0xfa   :  { %v1717_v21 = vadd.f32 %v2814_v49, %v1664_v20  ;;  %2360 = vmatmul.msk.bf16.gmra.mxu2 %vm194_vm2, %v2604_v18  ;;  %2530 = vmatmul.msk.bf16.gmra.mxu3 %vm194_vm2, %v2628_v19 }
  0xfc   :  { %v1766_v23 = vmax.f32 %v1717_v21, 0.0  ;;  %v2559_v21 = vld [vmem:[%s3323_s0 + $0x90] sm:$0xff] }
  0xfd   :  { %v1132_v24 = vpop.f32.mrf.mxu2  ;;  %v1562_v25 = vpop.f32.mrf.mxu3 }
  0xfe   :  { %v1815_v26 = vpack.c.bf16 %v1766_v23, %v1766_v23  ;;  %v1235_v27 = vmax.f32 %v805_v22, %v1132_v24  ;;  %v323_v28 = vpop.f32.mrf.mxu0  ;;  %v704_v29 = vpop.f32.mrf.mxu1  ;;  %v2583_v22 = vld [vmem:[%s3323_s0 + $0x154] sm:$0xff] }
  0xff   :  { %v806_v33 = vmax.f32 %v323_v28, %v704_v29  ;;  %v2631_v28 = vld [vmem:[%s3323_s0 + $0x2dc] sm:$0xff] }
 0x100   :  { %1865 = vst.msk [vmem:[%s3325_s3 + $0x34] sm:$0xf] %vm1851_vm3, %v1815_v26  ;;  %v1665_v30 = vmax.f32 %v1235_v27, %v1562_v25  ;;  %v2607_v27 = vld [vmem:[%s3323_s0 + $0x218] sm:$0xff] }
 0x102   :  { %v1718_v31 = vadd.f32 %v2814_v49, %v1665_v30 }
 0x104   :  { %v1767_v32 = vmax.f32 %v1718_v31, 0.0 }
 0x105   :  { %v1134_v34 = vpop.f32.mrf.mxu2  ;;  %v1564_v35 = vpop.f32.mrf.mxu3 }
 0x106   :  { %v1816_v38 = vpack.c.bf16 %v1767_v32, %v1767_v32  ;;  %v1236_v39 = vmax.f32 %v806_v33, %v1134_v34  ;;  %v326_v40 = vpop.f32.mrf.mxu0  ;;  %v707_v41 = vpop.f32.mrf.mxu1 }
 0x107   :  { %v807_v46 = vmax.f32 %v326_v40, %v707_v41 }
 0x108   :  { %1866 = vst.msk [vmem:[%s3325_s3 + $0x38] sm:$0xf] %vm1851_vm3, %v1816_v38  ;;  %v1666_v44 = vmax.f32 %v1236_v39, %v1564_v35 }
 0x109   :  { %2021 = vmatmul.msk.bf16.gmra.mxu0 %vm194_vm2, %v2557_v36  ;;  %2191 = vmatmul.msk.bf16.gmra.mxu1 %vm194_vm2, %v2581_v37 }
 0x10a   :  { %v1719_v45 = vadd.f32 %v2814_v49, %v1666_v44  ;;  %2361 = vmatmul.msk.bf16.gmra.mxu2 %vm194_vm2, %v2605_v42  ;;  %2531 = vmatmul.msk.bf16.gmra.mxu3 %vm194_vm2, %v2629_v43 }
 0x10c   :  { %v1768_v47 = vmax.f32 %v1719_v45, 0.0  ;;  %v2560_v45 = vld [vmem:[%s3323_s0 + $0x98] sm:$0xff] }
 0x10d   :  { %v1137_v48 = vpop.f32.mrf.mxu2  ;;  %v1567_v50 = vpop.f32.mrf.mxu3 }
 0x10e   :  { %v1817_v51 = vpack.c.bf16 %v1768_v47, %v1768_v47  ;;  %v1237_v52 = vmax.f32 %v807_v46, %v1137_v48  ;;  %v328_v53 = vpop.f32.mrf.mxu0  ;;  %v709_v54 = vpop.f32.mrf.mxu1  ;;  %v2584_v46 = vld [vmem:[%s3323_s0 + $0x15c] sm:$0xff] }
 0x10f   :  { %v808_v58 = vmax.f32 %v328_v53, %v709_v54  ;;  %v2632_v53 = vld [vmem:[%s3323_s0 + $0x2e4] sm:$0xff] }
 0x110   :  { %1867 = vst.msk [vmem:[%s3325_s3 + $0x3c] sm:$0xf] %vm1851_vm3, %v1817_v51  ;;  %v1667_v55 = vmax.f32 %v1237_v52, %v1567_v50  ;;  %v2608_v52 = vld [vmem:[%s3323_s0 + $0x220] sm:$0xff] }
 0x112   :  { %v1720_v56 = vadd.f32 %v2814_v49, %v1667_v55 }
 0x114   :  { %v1769_v57 = vmax.f32 %v1720_v56, 0.0 }
 0x115   :  { %v1139_v59 = vpop.f32.mrf.mxu2  ;;  %v1569_v60 = vpop.f32.mrf.mxu3 }
 0x116   :  { %v1818_v63 = vpack.c.bf16 %v1769_v57, %v1769_v57  ;;  %v1238_v0 = vmax.f32 %v808_v58, %v1139_v59  ;;  %v331_v1 = vpop.f32.mrf.mxu0  ;;  %v712_v2 = vpop.f32.mrf.mxu1 }
 0x117   :  { %v809_v7 = vmax.f32 %v331_v1, %v712_v2 }
 0x118   :  { %1868 = vst.msk [vmem:[%s3325_s3 + $0x40] sm:$0xf] %vm1851_vm3, %v1818_v63  ;;  %v1668_v5 = vmax.f32 %v1238_v0, %v1569_v60 }
 0x119   :  { %2022 = vmatmul.msk.bf16.gmra.mxu0 %vm194_vm2, %v2558_v61  ;;  %2192 = vmatmul.msk.bf16.gmra.mxu1 %vm194_vm2, %v2582_v62 }
 0x11a   :  { %v1721_v6 = vadd.f32 %v2814_v49, %v1668_v5  ;;  %2362 = vmatmul.msk.bf16.gmra.mxu2 %vm194_vm2, %v2606_v3  ;;  %2532 = vmatmul.msk.bf16.gmra.mxu3 %vm194_vm2, %v2630_v4 }
 0x11c   :  { %v1770_v8 = vmax.f32 %v1721_v6, 0.0  ;;  %v2561_v6 = vld [vmem:[%s3323_s0 + $0xa0] sm:$0xff] }
 0x11d   :  { %v1142_v9 = vpop.f32.mrf.mxu2  ;;  %v1572_v10 = vpop.f32.mrf.mxu3 }
 0x11e   :  { %v1819_v11 = vpack.c.bf16 %v1770_v8, %v1770_v8  ;;  %v1239_v12 = vmax.f32 %v809_v7, %v1142_v9  ;;  %v333_v13 = vpop.f32.mrf.mxu0  ;;  %v714_v14 = vpop.f32.mrf.mxu1  ;;  %v2585_v7 = vld [vmem:[%s3323_s0 + $0x164] sm:$0xff] }
 0x11f   :  { %v810_v18 = vmax.f32 %v333_v13, %v714_v14  ;;  %v2633_v13 = vld [vmem:[%s3323_s0 + $0x2ec] sm:$0xff] }
 0x120   :  { %1869 = vst.msk [vmem:[%s3325_s3 + $0x44] sm:$0xf] %vm1851_vm3, %v1819_v11  ;;  %v1669_v15 = vmax.f32 %v1239_v12, %v1572_v10  ;;  %v2609_v12 = vld [vmem:[%s3323_s0 + $0x228] sm:$0xff] }
 0x122   :  { %v1722_v16 = vadd.f32 %v2814_v49, %v1669_v15 }
 0x124   :  { %v1771_v17 = vmax.f32 %v1722_v16, 0.0 }
 0x125   :  { %v1144_v19 = vpop.f32.mrf.mxu2  ;;  %v1574_v20 = vpop.f32.mrf.mxu3 }
 0x126   :  { %v1820_v23 = vpack.c.bf16 %v1771_v17, %v1771_v17  ;;  %v1240_v24 = vmax.f32 %v810_v18, %v1144_v19  ;;  %v336_v25 = vpop.f32.mrf.mxu0  ;;  %v717_v26 = vpop.f32.mrf.mxu1 }
 0x127   :  { %v811_v31 = vmax.f32 %v336_v25, %v717_v26 }
 0x128   :  { %1870 = vst.msk [vmem:[%s3325_s3 + $0x48] sm:$0xf] %vm1851_vm3, %v1820_v23  ;;  %v1670_v29 = vmax.f32 %v1240_v24, %v1574_v20 }
 0x129   :  { %2023 = vmatmul.msk.bf16.gmra.mxu0 %vm194_vm2, %v2559_v21  ;;  %2193 = vmatmul.msk.bf16.gmra.mxu1 %vm194_vm2, %v2583_v22 }
 0x12a   :  { %v1723_v30 = vadd.f32 %v2814_v49, %v1670_v29  ;;  %2363 = vmatmul.msk.bf16.gmra.mxu2 %vm194_vm2, %v2607_v27  ;;  %2533 = vmatmul.msk.bf16.gmra.mxu3 %vm194_vm2, %v2631_v28 }
 0x12c   :  { %v1772_v32 = vmax.f32 %v1723_v30, 0.0  ;;  %v2562_v30 = vld [vmem:[%s3323_s0 + $0xa8] sm:$0xff] }
 0x12d   :  { %v1147_v33 = vpop.f32.mrf.mxu2  ;;  %v1577_v34 = vpop.f32.mrf.mxu3 }
 0x12e   :  { %v1821_v35 = vpack.c.bf16 %v1772_v32, %v1772_v32  ;;  %v1241_v36 = vmax.f32 %v811_v31, %v1147_v33  ;;  %v338_v37 = vpop.f32.mrf.mxu0  ;;  %v719_v38 = vpop.f32.mrf.mxu1  ;;  %v2586_v31 = vld [vmem:[%s3323_s0 + $0x16c] sm:$0xff] }
 0x12f   :  { %v812_v42 = vmax.f32 %v338_v37, %v719_v38  ;;  %v2634_v37 = vld [vmem:[%s3323_s0 + $0x2f4] sm:$0xff] }
 0x130   :  { %1871 = vst.msk [vmem:[%s3325_s3 + $0x4c] sm:$0xf] %vm1851_vm3, %v1821_v35  ;;  %v1671_v39 = vmax.f32 %v1241_v36, %v1577_v34  ;;  %v2610_v36 = vld [vmem:[%s3323_s0 + $0x230] sm:$0xff] }
 0x132   :  { %v1724_v40 = vadd.f32 %v2814_v49, %v1671_v39 }
 0x134   :  { %v1773_v41 = vmax.f32 %v1724_v40, 0.0 }
 0x135   :  { %v1149_v43 = vpop.f32.mrf.mxu2  ;;  %v1579_v44 = vpop.f32.mrf.mxu3 }
 0x136   :  { %v1822_v47 = vpack.c.bf16 %v1773_v41, %v1773_v41  ;;  %v1242_v48 = vmax.f32 %v812_v42, %v1149_v43  ;;  %v341_v50 = vpop.f32.mrf.mxu0  ;;  %v722_v51 = vpop.f32.mrf.mxu1 }
 0x137   :  { %v813_v56 = vmax.f32 %v341_v50, %v722_v51 }
 0x138   :  { %1872 = vst.msk [vmem:[%s3325_s3 + $0x50] sm:$0xf] %vm1851_vm3, %v1822_v47  ;;  %v1672_v54 = vmax.f32 %v1242_v48, %v1579_v44 }
 0x139   :  { %2024 = vmatmul.msk.bf16.gmra.mxu0 %vm194_vm2, %v2560_v45  ;;  %2194 = vmatmul.msk.bf16.gmra.mxu1 %vm194_vm2, %v2584_v46 }
 0x13a   :  { %v1725_v55 = vadd.f32 %v2814_v49, %v1672_v54  ;;  %2364 = vmatmul.msk.bf16.gmra.mxu2 %vm194_vm2, %v2608_v52  ;;  %2534 = vmatmul.msk.bf16.gmra.mxu3 %vm194_vm2, %v2632_v53 }
 0x13c   :  { %v1774_v57 = vmax.f32 %v1725_v55, 0.0  ;;  %v2563_v55 = vld [vmem:[%s3323_s0 + $0xb0] sm:$0xff] }
 0x13d   :  { %v1152_v58 = vpop.f32.mrf.mxu2  ;;  %v1582_v59 = vpop.f32.mrf.mxu3 }
 0x13e   :  { %v1823_v60 = vpack.c.bf16 %v1774_v57, %v1774_v57  ;;  %v1243_v61 = vmax.f32 %v813_v56, %v1152_v58  ;;  %v343_v62 = vpop.f32.mrf.mxu0  ;;  %v724_v63 = vpop.f32.mrf.mxu1  ;;  %v2587_v56 = vld [vmem:[%s3323_s0 + $0x174] sm:$0xff] }
 0x13f   :  { %v814_v3 = vmax.f32 %v343_v62, %v724_v63  ;;  %v2635_v62 = vld [vmem:[%s3323_s0 + $0x2fc] sm:$0xff] }
 0x140   :  { %1873 = vst.msk [vmem:[%s3325_s3 + $0x54] sm:$0xf] %vm1851_vm3, %v1823_v60  ;;  %v1673_v0 = vmax.f32 %v1243_v61, %v1582_v59  ;;  %v2611_v61 = vld [vmem:[%s3323_s0 + $0x238] sm:$0xff] }
 0x142   :  { %v1726_v1 = vadd.f32 %v2814_v49, %v1673_v0 }
 0x144   :  { %v1775_v2 = vmax.f32 %v1726_v1, 0.0 }
 0x145   :  { %v1154_v4 = vpop.f32.mrf.mxu2  ;;  %v1584_v5 = vpop.f32.mrf.mxu3 }
 0x146   :  { %v1824_v8 = vpack.c.bf16 %v1775_v2, %v1775_v2  ;;  %v1244_v9 = vmax.f32 %v814_v3, %v1154_v4  ;;  %v346_v10 = vpop.f32.mrf.mxu0  ;;  %v727_v11 = vpop.f32.mrf.mxu1 }
 0x147   :  { %v815_v16 = vmax.f32 %v346_v10, %v727_v11 }
 0x148   :  { %1874 = vst.msk [vmem:[%s3325_s3 + $0x58] sm:$0xf] %vm1851_vm3, %v1824_v8  ;;  %v1674_v14 = vmax.f32 %v1244_v9, %v1584_v5 }
 0x149   :  { %2025 = vmatmul.msk.bf16.gmra.mxu0 %vm194_vm2, %v2561_v6  ;;  %2195 = vmatmul.msk.bf16.gmra.mxu1 %vm194_vm2, %v2585_v7 }
 0x14a   :  { %v1727_v15 = vadd.f32 %v2814_v49, %v1674_v14  ;;  %2365 = vmatmul.msk.bf16.gmra.mxu2 %vm194_vm2, %v2609_v12  ;;  %2535 = vmatmul.msk.bf16.gmra.mxu3 %vm194_vm2, %v2633_v13 }
 0x14c   :  { %v1776_v17 = vmax.f32 %v1727_v15, 0.0  ;;  %v2564_v15 = vld [vmem:[%s3323_s0 + $0xb8] sm:$0xff] }
 0x14d   :  { %v1157_v18 = vpop.f32.mrf.mxu2  ;;  %v1587_v19 = vpop.f32.mrf.mxu3 }
 0x14e   :  { %v1825_v20 = vpack.c.bf16 %v1776_v17, %v1776_v17  ;;  %v1245_v21 = vmax.f32 %v815_v16, %v1157_v18  ;;  %v348_v22 = vpop.f32.mrf.mxu0  ;;  %v729_v23 = vpop.f32.mrf.mxu1  ;;  %v2588_v16 = vld [vmem:[%s3323_s0 + $0x17c] sm:$0xff] }
 0x14f   :  { %v816_v27 = vmax.f32 %v348_v22, %v729_v23  ;;  %v2636_v22 = vld [vmem:[%s3323_s0 + $0x304] sm:$0xff] }
 0x150   :  { %1875 = vst.msk [vmem:[%s3325_s3 + $0x5c] sm:$0xf] %vm1851_vm3, %v1825_v20  ;;  %v1675_v24 = vmax.f32 %v1245_v21, %v1587_v19  ;;  %v2612_v21 = vld [vmem:[%s3323_s0 + $0x240] sm:$0xff] }
 0x152   :  { %v1728_v25 = vadd.f32 %v2814_v49, %v1675_v24 }
 0x154   :  { %v1777_v26 = vmax.f32 %v1728_v25, 0.0 }
 0x155   :  { %v1159_v28 = vpop.f32.mrf.mxu2  ;;  %v1589_v29 = vpop.f32.mrf.mxu3 }
 0x156   :  { %v1826_v32 = vpack.c.bf16 %v1777_v26, %v1777_v26  ;;  %v1246_v33 = vmax.f32 %v816_v27, %v1159_v28  ;;  %v351_v34 = vpop.f32.mrf.mxu0  ;;  %v732_v35 = vpop.f32.mrf.mxu1 }
 0x157   :  { %v817_v40 = vmax.f32 %v351_v34, %v732_v35  ;;  %v2078_v34 = vld [vmem:[%s3323_s0 + $0x184] sm:$0xf]  ;;  %v2248_v35 = vld [vmem:[%s3323_s0 + $0x248] sm:$0xf] }
 0x158   :  { %1876 = vst.msk [vmem:[%s3325_s3 + $0x60] sm:$0xf] %vm1851_vm3, %v1826_v32  ;;  %v1676_v38 = vmax.f32 %v1246_v33, %v1589_v29  ;;  %v65_v33 = vld [vmem:[%s3323_s0 + $0xc0] sm:$0xf] }
 0x159   :  { %2026 = vmatmul.msk.bf16.gmra.mxu0 %vm194_vm2, %v2562_v30  ;;  %2196 = vmatmul.msk.bf16.gmra.mxu1 %vm194_vm2, %v2586_v31 }
 0x15a   :  { %v1729_v39 = vadd.f32 %v2814_v49, %v1676_v38  ;;  %2366 = vmatmul.msk.bf16.gmra.mxu2 %vm194_vm2, %v2610_v36  ;;  %2536 = vmatmul.msk.bf16.gmra.mxu3 %vm194_vm2, %v2634_v37  ;;  %v2418_v36 = vld [vmem:[%s3323_s0 + $0x30c] sm:$0xf]  ;;  %v163_v38 = vunpack.c.l.b16 %v65_v33 }
 0x15c   :  { %v1778_v41 = vmax.f32 %v1729_v39, 0.0  ;;  %v557_v39 = vunpack.c.l.b16 %v2078_v34 }
 0x15d   :  { %v1162_v42 = vpop.f32.mrf.mxu2  ;;  %v1592_v43 = vpop.f32.mrf.mxu3 }
 0x15e   :  { %v1827_v44 = vpack.c.bf16 %v1778_v41, %v1778_v41  ;;  %v1247_v45 = vmax.f32 %v817_v40, %v1162_v42  ;;  %v353_v46 = vpop.f32.mrf.mxu0  ;;  %v734_v47 = vpop.f32.mrf.mxu1  ;;  %v987_v41 = vunpack.c.l.b16 %v2248_v35  ;;  %v1417_v42 = vunpack.c.l.b16 %v2418_v36 }
 0x15f   :  { %v818_v52 = vmax.f32 %v353_v46, %v734_v47  ;;  %v188_v47 = vpack.c.b16 %v163_v38, %v163_v38 }
 0x160   :  { %1877 = vst.msk [vmem:[%s3325_s3 + $0x64] sm:$0xf] %vm1851_vm3, %v1827_v44  ;;  %v1677_v48 = vmax.f32 %v1247_v45, %v1592_v43 }
 0x162   :  { %v1730_v50 = vadd.f32 %v2814_v49, %v1677_v48  ;;  %v582_v48 = vpack.c.b16 %v557_v39, %v557_v39 }
 0x164   :  { %v1779_v51 = vmax.f32 %v1730_v50, 0.0 }
 0x165   :  { %v1164_v53 = vpop.f32.mrf.mxu2  ;;  %v1594_v54 = vpop.f32.mrf.mxu3 }
 0x166   :  { %v1828_v57 = vpack.c.bf16 %v1779_v51, %v1779_v51  ;;  %v1248_v58 = vmax.f32 %v818_v52, %v1164_v53  ;;  %v356_v59 = vpop.f32.mrf.mxu0  ;;  %v737_v60 = vpop.f32.mrf.mxu1 }
 0x167   :  { %v819_v1 = vmax.f32 %v356_v59, %v737_v60 }
 0x168   :  { %1878 = vst.msk [vmem:[%s3325_s3 + $0x68] sm:$0xf] %vm1851_vm3, %v1828_v57  ;;  %v1678_v63 = vmax.f32 %v1248_v58, %v1594_v54  ;;  %v1012_v54 = vpack.c.b16 %v987_v41, %v987_v41 }
 0x169   :  { %2027 = vmatmul.msk.bf16.gmra.mxu0 %vm194_vm2, %v2563_v55  ;;  %2197 = vmatmul.msk.bf16.gmra.mxu1 %vm194_vm2, %v2587_v56  ;;  %v1442_v55 = vpack.c.b16 %v1417_v42, %v1417_v42 }
 0x16a   :  { %v1731_v0 = vadd.f32 %v2814_v49, %v1678_v63  ;;  %2367 = vmatmul.msk.bf16.gmra.mxu2 %vm194_vm2, %v2611_v61  ;;  %2537 = vmatmul.msk.bf16.gmra.mxu3 %vm194_vm2, %v2635_v62 }
 0x16c   :  { %v1780_v2 = vmax.f32 %v1731_v0, 0.0 }
 0x16d   :  { %v1167_v3 = vpop.f32.mrf.mxu2  ;;  %v1597_v4 = vpop.f32.mrf.mxu3 }
 0x16e   :  { %v1829_v5 = vpack.c.bf16 %v1780_v2, %v1780_v2  ;;  %v1249_v6 = vmax.f32 %v819_v1, %v1167_v3  ;;  %v358_v7 = vpop.f32.mrf.mxu0  ;;  %v739_v8 = vpop.f32.mrf.mxu1 }
 0x16f   :  { %v820_v12 = vmax.f32 %v358_v7, %v739_v8 }
 0x170   :  { %1879 = vst.msk [vmem:[%s3325_s3 + $0x6c] sm:$0xf] %vm1851_vm3, %v1829_v5  ;;  %v1679_v9 = vmax.f32 %v1249_v6, %v1597_v4 }
 0x172   :  { %v1732_v10 = vadd.f32 %v2814_v49, %v1679_v9 }
 0x174   :  { %v1781_v11 = vmax.f32 %v1732_v10, 0.0 }
 0x175   :  { %v1169_v13 = vpop.f32.mrf.mxu2  ;;  %v1599_v14 = vpop.f32.mrf.mxu3 }
 0x176   :  { %v1830_v17 = vpack.c.bf16 %v1781_v11, %v1781_v11  ;;  %v1250_v18 = vmax.f32 %v820_v12, %v1169_v13  ;;  %v361_v19 = vpop.f32.mrf.mxu0  ;;  %v742_v20 = vpop.f32.mrf.mxu1 }
 0x177   :  { %v821_v25 = vmax.f32 %v361_v19, %v742_v20 }
 0x178   :  { %1880 = vst.msk [vmem:[%s3325_s3 + $0x70] sm:$0xf] %vm1851_vm3, %v1830_v17  ;;  %v1680_v23 = vmax.f32 %v1250_v18, %v1599_v14 }
 0x179   :  { %2028 = vmatmul.msk.bf16.gmra.mxu0 %vm194_vm2, %v2564_v15  ;;  %2198 = vmatmul.msk.bf16.gmra.mxu1 %vm194_vm2, %v2588_v16 }
 0x17a   :  { %v1733_v24 = vadd.f32 %v2814_v49, %v1680_v23  ;;  %2368 = vmatmul.msk.bf16.gmra.mxu2 %vm194_vm2, %v2612_v21  ;;  %2538 = vmatmul.msk.bf16.gmra.mxu3 %vm194_vm2, %v2636_v22  ;;  %v3245_v23 = vld [vmem:[%s3324_s2] ss:$0 sm:$0xff] }
 0x17c   :  { %v1782_v26 = vmax.f32 %v1733_v24, 0.0 }
 0x17d   :  { %v1172_v27 = vpop.f32.mrf.mxu2  ;;  %v1602_v28 = vpop.f32.mrf.mxu3 }
 0x17e   :  { %v1831_v29 = vpack.c.bf16 %v1782_v26, %v1782_v26  ;;  %v1251_v30 = vmax.f32 %v821_v25, %v1172_v27  ;;  %v363_v31 = vpop.f32.mrf.mxu0  ;;  %v744_v32 = vpop.f32.mrf.mxu1 }
 0x17f   :  { %v822_v44 = vmax.f32 %v363_v31, %v744_v32 }
 0x180   :  { %1881 = vst.msk [vmem:[%s3325_s3 + $0x74] sm:$0xf] %vm1851_vm3, %v1831_v29  ;;  %v1681_v37 = vmax.f32 %v1251_v30, %v1602_v28 }
 0x182   :  { %v1734_v40 = vadd.f32 %v2814_v49, %v1681_v37 }
 0x184   :  { %v1783_v43 = vmax.f32 %v1734_v40, 0.0 }
 0x185   :  { %v1174_v45 = vpop.f32.mrf.mxu2  ;;  %v1604_v46 = vpop.f32.mrf.mxu3 }
 0x186   :  { %v1832_v50 = vpack.c.bf16 %v1783_v43, %v1783_v43  ;;  %v1252_v51 = vmax.f32 %v822_v44, %v1174_v45  ;;  %v366_v52 = vpop.f32.mrf.mxu0  ;;  %v747_v53 = vpop.f32.mrf.mxu1 }
 0x187   :  { %v823_v58 = vmax.f32 %v366_v52, %v747_v53 }
 0x188   :  { %1882 = vst.msk [vmem:[%s3325_s3 + $0x78] sm:$0xf] %vm1851_vm3, %v1832_v50  ;;  %v1682_v56 = vmax.f32 %v1252_v51, %v1604_v46 }
 0x189   :  { %2029 = vmatmul.msk.bf16.gmra.mxu0 %vm194_vm2, %v188_v47  ;;  %2199 = vmatmul.msk.bf16.gmra.mxu1 %vm194_vm2, %v582_v48 }
 0x18a   :  { %v1735_v57 = vadd.f32 %v2814_v49, %v1682_v56  ;;  %2369 = vmatmul.msk.bf16.gmra.mxu2 %vm194_vm2, %v1012_v54  ;;  %2539 = vmatmul.msk.bf16.gmra.mxu3 %vm194_vm2, %v1442_v55 }
 0x18c   :  { %v1784_v59 = vmax.f32 %v1735_v57, 0.0 }
 0x18d   :  { %v1177_v60 = vpop.f32.mrf.mxu2  ;;  %v1607_v61 = vpop.f32.mrf.mxu3 }
 0x18e   :  { %v1833_v62 = vpack.c.bf16 %v1784_v59, %v1784_v59  ;;  %v1253_v63 = vmax.f32 %v823_v58, %v1177_v60  ;;  %v368_v0 = vpop.f32.mrf.mxu0  ;;  %v749_v1 = vpop.f32.mrf.mxu1 }
 0x18f   :  { %v824_v5 = vmax.f32 %v368_v0, %v749_v1 }
 0x190   :  { %1883 = vst.msk [vmem:[%s3325_s3 + $0x7c] sm:$0xf] %vm1851_vm3, %v1833_v62  ;;  %v1683_v2 = vmax.f32 %v1253_v63, %v1607_v61 }
 0x192   :  { %v1736_v3 = vadd.f32 %v2814_v49, %v1683_v2 }
 0x194   :  { %v1785_v4 = vmax.f32 %v1736_v3, 0.0 }
 0x195   :  { %v1179_v6 = vpop.f32.mrf.mxu2  ;;  %v1609_v7 = vpop.f32.mrf.mxu3 }
 0x196   :  { %v1834_v8 = vpack.c.bf16 %v1785_v4, %v1785_v4  ;;  %v1254_v9 = vmax.f32 %v824_v5, %v1179_v6  ;;  %v371_v10 = vpop.f32.mrf.mxu0  ;;  %v752_v11 = vpop.f32.mrf.mxu1 }
 0x197   :  { %v825_v14 = vmax.f32 %v371_v10, %v752_v11 }
 0x198   :  { %1884 = vst.msk [vmem:[%s3325_s3 + $0x80] sm:$0xf] %vm1851_vm3, %v1834_v8  ;;  %v1684_v12 = vmax.f32 %v1254_v9, %v1609_v7 }
 0x19a   :  { %v1737_v13 = vadd.f32 %v2814_v49, %v1684_v12 }
 0x19c   :  { %v1786_v15 = vmax.f32 %v1737_v13, 0.0 }
 0x19d   :  { %v1182_v16 = vpop.f32.mrf.mxu2  ;;  %v1612_v17 = vpop.f32.mrf.mxu3 }
 0x19e   :  { %v1835_v18 = vpack.c.bf16 %v1786_v15, %v1786_v15  ;;  %v1255_v19 = vmax.f32 %v825_v14, %v1182_v16  ;;  %v373_v20 = vpop.f32.mrf.mxu0  ;;  %v754_v21 = vpop.f32.mrf.mxu1 }
 0x19f   :  { %v826_v25 = vmax.f32 %v373_v20, %v754_v21 }
 0x1a0   :  { %1885 = vst.msk [vmem:[%s3325_s3 + $0x84] sm:$0xf] %vm1851_vm3, %v1835_v18  ;;  %v1685_v22 = vmax.f32 %v1255_v19, %v1612_v17 }
 0x1a2   :  { %v1738_v49 = vadd.f32 %v3245_v23, %v1685_v22 }
 0x1a4   :  { %v1787_v24 = vmax.f32 %v1738_v49, 0.0 }
 0x1a5   :  { %v1184_v26 = vpop.f32.mrf.mxu2  ;;  %v1614_v27 = vpop.f32.mrf.mxu3 }
 0x1a6   :  { %v1836_v28 = vpack.c.bf16 %v1787_v24, %v1787_v24  ;;  %v1256_v29 = vmax.f32 %v826_v25, %v1184_v26  ;;  %v376_v30 = vpop.f32.mrf.mxu0  ;;  %v757_v31 = vpop.f32.mrf.mxu1 }
 0x1a7   :  { %v827_v34 = vmax.f32 %v376_v30, %v757_v31 }
 0x1a8   :  { %1886 = vst.msk [vmem:[%s3325_s3 + $0x88] sm:$0xf] %vm1851_vm3, %v1836_v28  ;;  %v1686_v32 = vmax.f32 %v1256_v29, %v1614_v27 }
 0x1aa   :  { %v1739_v33 = vadd.f32 %v3245_v23, %v1686_v32 }
 0x1ac   :  { %v1788_v35 = vmax.f32 %v1739_v33, 0.0 }
 0x1ad   :  { %v1187_v36 = vpop.f32.mrf.mxu2  ;;  %v1617_v37 = vpop.f32.mrf.mxu3 }
 0x1ae   :  { %v1837_v38 = vpack.c.bf16 %v1788_v35, %v1788_v35  ;;  %v1257_v39 = vmax.f32 %v827_v34, %v1187_v36  ;;  %v378_v40 = vpop.f32.mrf.mxu0  ;;  %v759_v41 = vpop.f32.mrf.mxu1 }
 0x1af   :  { %v828_v45 = vmax.f32 %v378_v40, %v759_v41 }
 0x1b0   :  { %1887 = vst.msk [vmem:[%s3325_s3 + $0x8c] sm:$0xf] %vm1851_vm3, %v1837_v38  ;;  %v1687_v42 = vmax.f32 %v1257_v39, %v1617_v37 }
 0x1b2   :  { %v1740_v43 = vadd.f32 %v3245_v23, %v1687_v42 }
 0x1b4   :  { %v1789_v44 = vmax.f32 %v1740_v43, 0.0 }
 0x1b5   :  { %v1189_v46 = vpop.f32.mrf.mxu2  ;;  %v1619_v47 = vpop.f32.mrf.mxu3 }
 0x1b6   :  { %v1838_v48 = vpack.c.bf16 %v1789_v44, %v1789_v44  ;;  %v1258_v50 = vmax.f32 %v828_v45, %v1189_v46  ;;  %v381_v51 = vpop.f32.mrf.mxu0  ;;  %v762_v52 = vpop.f32.mrf.mxu1 }
 0x1b7   :  { %v829_v55 = vmax.f32 %v381_v51, %v762_v52 }
 0x1b8   :  { %1888 = vst.msk [vmem:[%s3325_s3 + $0x90] sm:$0xf] %vm1851_vm3, %v1838_v48  ;;  %v1688_v53 = vmax.f32 %v1258_v50, %v1619_v47 }
 0x1ba   :  { %v1741_v54 = vadd.f32 %v3245_v23, %v1688_v53 }
 0x1bc   :  { %v1790_v56 = vmax.f32 %v1741_v54, 0.0 }
 0x1bd   :  { %v1192_v57 = vpop.f32.mrf.mxu2  ;;  %v1622_v58 = vpop.f32.mrf.mxu3 }
 0x1be   :  { %v1839_v59 = vpack.c.bf16 %v1790_v56, %v1790_v56  ;;  %v1259_v60 = vmax.f32 %v829_v55, %v1192_v57  ;;  %v383_v61 = vpop.f32.mrf.mxu0  ;;  %v764_v62 = vpop.f32.mrf.mxu1 }
 0x1bf   :  { %v830_v2 = vmax.f32 %v383_v61, %v764_v62 }
 0x1c0   :  { %1889 = vst.msk [vmem:[%s3325_s3 + $0x94] sm:$0xf] %vm1851_vm3, %v1839_v59  ;;  %v1689_v63 = vmax.f32 %v1259_v60, %v1622_v58 }
 0x1c2   :  { %v1742_v0 = vadd.f32 %v3245_v23, %v1689_v63 }
 0x1c4   :  { %v1791_v1 = vmax.f32 %v1742_v0, 0.0 }
 0x1c5   :  { %v1194_v3 = vpop.f32.mrf.mxu2  ;;  %v1624_v4 = vpop.f32.mrf.mxu3 }
 0x1c6   :  { %v1840_v5 = vpack.c.bf16 %v1791_v1, %v1791_v1  ;;  %v1260_v6 = vmax.f32 %v830_v2, %v1194_v3  ;;  %v386_v7 = vpop.f32.mrf.mxu0  ;;  %v767_v8 = vpop.f32.mrf.mxu1 }
 0x1c7   :  { %v831_v11 = vmax.f32 %v386_v7, %v767_v8 }
 0x1c8   :  { %1890 = vst.msk [vmem:[%s3325_s3 + $0x98] sm:$0xf] %vm1851_vm3, %v1840_v5  ;;  %v1690_v9 = vmax.f32 %v1260_v6, %v1624_v4 }
 0x1ca   :  { %v1743_v10 = vadd.f32 %v3245_v23, %v1690_v9 }
 0x1cc   :  { %v1792_v12 = vmax.f32 %v1743_v10, 0.0 }
 0x1cd   :  { %v1197_v13 = vpop.f32.mrf.mxu2  ;;  %v1627_v14 = vpop.f32.mrf.mxu3 }
 0x1ce   :  { %v1841_v15 = vpack.c.bf16 %v1792_v12, %v1792_v12  ;;  %v1261_v16 = vmax.f32 %v831_v11, %v1197_v13  ;;  %v388_v17 = vpop.f32.mrf.mxu0  ;;  %v769_v18 = vpop.f32.mrf.mxu1 }
 0x1cf   :  { %v832_v22 = vmax.f32 %v388_v17, %v769_v18 }
 0x1d0   :  { %1891 = vst.msk [vmem:[%s3325_s3 + $0x9c] sm:$0xf] %vm1851_vm3, %v1841_v15  ;;  %v1691_v19 = vmax.f32 %v1261_v16, %v1627_v14 }
 0x1d2   :  { %v1744_v20 = vadd.f32 %v3245_v23, %v1691_v19 }
 0x1d4   :  { %v1793_v21 = vmax.f32 %v1744_v20, 0.0 }
 0x1d5   :  { %v1199_v49 = vpop.f32.mrf.mxu2  ;;  %v1629_v24 = vpop.f32.mrf.mxu3 }
 0x1d6   :  { %v1842_v25 = vpack.c.bf16 %v1793_v21, %v1793_v21  ;;  %v1262_v26 = vmax.f32 %v832_v22, %v1199_v49  ;;  %v391_v27 = vpop.f32.mrf.mxu0  ;;  %v772_v28 = vpop.f32.mrf.mxu1 }
 0x1d7   :  { %v833_v31 = vmax.f32 %v391_v27, %v772_v28 }
 0x1d8   :  { %1892 = vst.msk [vmem:[%s3325_s3 + $0xa0] sm:$0xf] %vm1851_vm3, %v1842_v25  ;;  %v1692_v29 = vmax.f32 %v1262_v26, %v1629_v24 }
 0x1da   :  { %v1745_v30 = vadd.f32 %v3245_v23, %v1692_v29 }
 0x1dc   :  { %v1794_v32 = vmax.f32 %v1745_v30, 0.0 }
 0x1dd   :  { %v1202_v33 = vpop.f32.mrf.mxu2  ;;  %v1632_v34 = vpop.f32.mrf.mxu3 }
 0x1de   :  { %v1843_v35 = vpack.c.bf16 %v1794_v32, %v1794_v32  ;;  %v1263_v36 = vmax.f32 %v833_v31, %v1202_v33  ;;  %v393_v37 = vpop.f32.mrf.mxu0  ;;  %v774_v38 = vpop.f32.mrf.mxu1 }
 0x1df   :  { %v834_v42 = vmax.f32 %v393_v37, %v774_v38 }
 0x1e0   :  { %1893 = vst.msk [vmem:[%s3325_s3 + $0xa4] sm:$0xf] %vm1851_vm3, %v1843_v35  ;;  %v1693_v39 = vmax.f32 %v1263_v36, %v1632_v34 }
 0x1e2   :  { %v1746_v40 = vadd.f32 %v3245_v23, %v1693_v39 }
 0x1e4   :  { %v1795_v41 = vmax.f32 %v1746_v40, 0.0 }
 0x1e5   :  { %v1204_v43 = vpop.f32.mrf.mxu2  ;;  %v1634_v44 = vpop.f32.mrf.mxu3 }
 0x1e6   :  { %v1844_v45 = vpack.c.bf16 %v1795_v41, %v1795_v41  ;;  %v1264_v46 = vmax.f32 %v834_v42, %v1204_v43  ;;  %v396_v47 = vpop.f32.mrf.mxu0  ;;  %v777_v48 = vpop.f32.mrf.mxu1 }
 0x1e7   :  { %v835_v52 = vmax.f32 %v396_v47, %v777_v48 }
 0x1e8   :  { %1894 = vst.msk [vmem:[%s3325_s3 + $0xa8] sm:$0xf] %vm1851_vm3, %v1844_v45  ;;  %v1694_v50 = vmax.f32 %v1264_v46, %v1634_v44 }
 0x1ea   :  { %v1747_v51 = vadd.f32 %v3245_v23, %v1694_v50 }
 0x1ec   :  { %v1796_v53 = vmax.f32 %v1747_v51, 0.0 }
 0x1ed   :  { %v1207_v54 = vpop.f32.mrf.mxu2  ;;  %v1637_v55 = vpop.f32.mrf.mxu3 }
 0x1ee   :  { %v1845_v56 = vpack.c.bf16 %v1796_v53, %v1796_v53  ;;  %v1265_v57 = vmax.f32 %v835_v52, %v1207_v54  ;;  %v398_v58 = vpop.f32.mrf.mxu0  ;;  %v779_v59 = vpop.f32.mrf.mxu1 }
 0x1ef   :  { %v836_v63 = vmax.f32 %v398_v58, %v779_v59 }
 0x1f0   :  { %1895 = vst.msk [vmem:[%s3325_s3 + $0xac] sm:$0xf] %vm1851_vm3, %v1845_v56  ;;  %v1695_v60 = vmax.f32 %v1265_v57, %v1637_v55 }
 0x1f2   :  { %v1748_v61 = vadd.f32 %v3245_v23, %v1695_v60 }
 0x1f4   :  { %v1797_v62 = vmax.f32 %v1748_v61, 0.0 }
 0x1f5   :  { %v1209_v0 = vpop.f32.mrf.mxu2  ;;  %v1639_v1 = vpop.f32.mrf.mxu3 }
 0x1f6   :  { %v1846_v2 = vpack.c.bf16 %v1797_v62, %v1797_v62  ;;  %v1266_v3 = vmax.f32 %v836_v63, %v1209_v0  ;;  %v401_v4 = vpop.f32.mrf.mxu0  ;;  %v782_v5 = vpop.f32.mrf.mxu1 }
 0x1f7   :  { %v837_v8 = vmax.f32 %v401_v4, %v782_v5 }
 0x1f8   :  { %1896 = vst.msk [vmem:[%s3325_s3 + $0xb0] sm:$0xf] %vm1851_vm3, %v1846_v2  ;;  %v1696_v6 = vmax.f32 %v1266_v3, %v1639_v1 }
 0x1fa   :  { %v1749_v7 = vadd.f32 %v3245_v23, %v1696_v6 }
 0x1fc   :  { %v1798_v9 = vmax.f32 %v1749_v7, 0.0 }
 0x1fd   :  { %v1212_v10 = vpop.f32.mrf.mxu2  ;;  %v1642_v11 = vpop.f32.mrf.mxu3 }
 0x1fe   :  { %v1847_v12 = vpack.c.bf16 %v1798_v9, %v1798_v9  ;;  %v1267_v13 = vmax.f32 %v837_v8, %v1212_v10  ;;  %v403_v14 = vpop.f32.mrf.mxu0  ;;  %v784_v15 = vpop.f32.mrf.mxu1 }
 0x1ff   :  { %v838_v19 = vmax.f32 %v403_v14, %v784_v15 }
 0x200   :  { %1897 = vst.msk [vmem:[%s3325_s3 + $0xb4] sm:$0xf] %vm1851_vm3, %v1847_v12  ;;  %v1697_v16 = vmax.f32 %v1267_v13, %v1642_v11 }
 0x202   :  { %v1750_v17 = vadd.f32 %v3245_v23, %v1697_v16 }
 0x204   :  { %v1799_v18 = vmax.f32 %v1750_v17, 0.0 }
 0x205   :  { %v1214_v20 = vpop.f32.mrf.mxu2  ;;  %v1644_v21 = vpop.f32.mrf.mxu3 }
 0x206   :  { %v1848_v22 = vpack.c.bf16 %v1799_v18, %v1799_v18  ;;  %v1268_v49 = vmax.f32 %v838_v19, %v1214_v20  ;;  %v406_v24 = vpop.f32.mrf.mxu0  ;;  %v787_v25 = vpop.f32.mrf.mxu1 }
 0x207   :  { %v839_v28 = vmax.f32 %v406_v24, %v787_v25 }
 0x208   :  { %1898 = vst.msk [vmem:[%s3325_s3 + $0xb8] sm:$0xf] %vm1851_vm3, %v1848_v22  ;;  %v1698_v26 = vmax.f32 %v1268_v49, %v1644_v21 }
 0x20a   :  { %v1751_v27 = vadd.f32 %v3245_v23, %v1698_v26 }
 0x20c   :  { %v1800_v29 = vmax.f32 %v1751_v27, 0.0 }
 0x20d   :  { %v1217_v30 = vpop.f32.mrf.mxu2  ;;  %v1647_v31 = vpop.f32.mrf.mxu3 }
 0x20e   :  { %v1849_v32 = vpack.c.bf16 %v1800_v29, %v1800_v29  ;;  %v1269_v33 = vmax.f32 %v839_v28, %v1217_v30  ;;  %v408_v34 = vpop.f32.mrf.mxu0  ;;  %v789_v35 = vpop.f32.mrf.mxu1 }
 0x210   :  { %1899 = vst.msk [vmem:[%s3325_s3 + $0xbc] sm:$0xf] %vm1851_vm3, %v1849_v32  ;;  %v1699_v36 = vmax.f32 %v1269_v33, %v1647_v31 }
 0x212   :  { %v1752_v37 = vadd.f32 %v3245_v23, %v1699_v36 }
 0x214   :  { %v1801_v38 = vmax.f32 %v1752_v37, 0.0 }
 0x215   :  { %v1219_v39 = vpop.f32.mrf.mxu2  ;;  %v1649_v40 = vpop.f32.mrf.mxu3 }
 0x216   :  { %v1850_v41 = vpack.c.bf16 %v1801_v38, %v1801_v38 }
 0x218   :  { %1900 = vst.msk [vmem:[%s3325_s3 + $0xc0] sm:$0xf] %vm1851_vm3, %v1850_v41 }

// kernel: mnist_convnet_forward.5
= control target key start
LH: loop header
LB: loop body
LE: loop exit
PB: predicated region body
PF: predicated region fallthrough
CT: control target
= control target key end

     0   :  { %vm160_vm0 = vcmask 130048   ;;  %vm893_vm1 = vcmask 257024   ;;  %s1826_s1 = inlined_call_operand.vmem [shape: bf16[144,32], index: 1, kind: input, shape index: {}]   ;;  %s1827_s0 = inlined_call_operand.vmem [shape: bf16[4,104,144], index: 0, kind: input, shape index: {}]   ;;  %s1828_s2 = inlined_call_operand.vmem [shape: f32[1,32], index: 2, kind: input, shape index: {}]   ;;  %s1829_s3 = inlined_call_operand.vmem [shape: bf16[104,32], index: 3, kind: output, shape index: {}]  }
   0x1   :  { %v1213_v0 = vld [vmem:[%s1826_s1 + $0x38] sm:$0xff]  ;;  %v1214_v1 = vld [vmem:[%s1826_s1 + $0x40] sm:$0xff]  ;;  %v1227_v2 = vld [vmem:[%s1827_s0 + $0x6c] sm:$0xf] }
   0x2   :  { %v1019_v3 = vld [vmem:[%s1827_s0 + $0x70] sm:$0xf0]  ;;  %182 = vmatpush.bf16.msra.mxu0 %v1213_v0  ;;  %363 = vmatpush.bf16.msra.mxu2 %v1213_v0  ;;  %v1215_v6 = vld [vmem:[%s1827_s0 + $0x4] sm:$0xf]  ;;  %v915_v7 = vld [vmem:[%s1827_s0 + $0x8] sm:$0xf0] }
   0x3   :  { %v1022_v4 = vor.u32 %v1227_v2, %v1019_v3  ;;  %v1212_v5 = vld [vmem:[%s1826_s1 + $0x30] sm:$0xff]  ;;  %413 = vmatpush.bf16.msra.mxu3 %v1214_v1  ;;  %232 = vmatpush.bf16.msra.mxu1 %v1214_v1  ;;  %v918_v8 = vor.u32 %v1215_v6, %v915_v7  ;;  %v1211_v9 = vld [vmem:[%s1826_s1 + $0x28] sm:$0xff]  ;;  %v1210_v10 = vld [vmem:[%s1826_s1 + $0x20] sm:$0xff] }
   0x4   :  { %v1209_v11 = vld [vmem:[%s1826_s1 + $0x18] sm:$0xff]  ;;  %v1027_v13 = vld [vmem:[%s1827_s0 + $0x80] sm:$0xf0]  ;;  %v1217_v14 = vld [vmem:[%s1827_s0 + $0x14] sm:$0xf] }
   0x5   :  { %v1229_v12 = vld [vmem:[%s1827_s0 + $0x7c] sm:$0xf]  ;;  %v1208_v17 = vld [vmem:[%s1826_s1 + $0x10] sm:$0xff]  ;;  %v1207_v19 = vld [vmem:[%s1826_s1 + $0x8] sm:$0xff] }
   0x6   :  { %1063 = vmatmul.msk.bf16.vlgmr.msra.gmra.mxu3 %vm160_vm0, %v1022_v4  ;;  %183 = vmatpush.bf16.msra.mxu0 %v1212_v5  ;;  %v923_v15 = vld [vmem:[%s1827_s0 + $0x18] sm:$0xf0]  ;;  %v1030_v16 = vor.u32 %v1229_v12, %v1027_v13  ;;  %v1206_v20 = vld [vmem:[%s1826_s1] sm:$0xff]  ;;  %v1216_v22 = vld [vmem:[%s1827_s0 + $0x4] sm:$0xf0] }
   0x7   :  { %607 = vmatpush.bf16.msrb.mxu3 %v1214_v1  ;;  %557 = vmatpush.bf16.msrb.mxu1 %v1213_v0  ;;  %v926_v18 = vor.u32 %v1217_v14, %v923_v15  ;;  %v913_v21 = vld [vmem:[%s1827_s0] sm:$0xf]  ;;  %v1017_v23 = vld [vmem:[%s1827_s0 + $0x68] sm:$0xf]  ;;  %v1228_v24 = vld [vmem:[%s1827_s0 + $0x6c] sm:$0xf0] }
   0x8   :  { %364 = vmatpush.bf16.msra.mxu2 %v1212_v5  ;;  %995 = vmatmul.msk.bf16.vlgmr.msra.gmra.mxu1 %vm160_vm0, %v918_v8  ;;  %v914_v25 = vor.u32 %v1216_v22, %v913_v21  ;;  %v1018_v26 = vor.u32 %v1228_v24, %v1017_v23  ;;  %v1231_v27 = vld [vmem:[%s1827_s0 + $0x8c] sm:$0xf]  ;;  %v1035_v28 = vld [vmem:[%s1827_s0 + $0x90] sm:$0xf0]  ;;  %v1219_v29 = vld [vmem:[%s1827_s0 + $0x24] sm:$0xf] }
   0x9   :  { %v931_v30 = vld [vmem:[%s1827_s0 + $0x28] sm:$0xf0]  ;;  %v1038_v31 = vor.u32 %v1231_v27, %v1035_v28  ;;  %v921_v33 = vld [vmem:[%s1827_s0 + $0x10] sm:$0xf]  ;;  %v1218_v34 = vld [vmem:[%s1827_s0 + $0x14] sm:$0xf0] }
   0xa   :  { %184 = vmatpush.bf16.msra.mxu0 %v1211_v9  ;;  %v934_v32 = vor.u32 %v1219_v29, %v931_v30  ;;  %v1025_v35 = vld [vmem:[%s1827_s0 + $0x78] sm:$0xf]  ;;  %v1230_v36 = vld [vmem:[%s1827_s0 + $0x7c] sm:$0xf0]  ;;  %v922_v37 = vor.u32 %v1218_v34, %v921_v33  ;;  %v1233_v39 = vld [vmem:[%s1827_s0 + $0x9c] sm:$0xf] }
   0xb   :  { %558 = vmatpush.bf16.msrb.mxu1 %v1212_v5  ;;  %v1026_v38 = vor.u32 %v1230_v36, %v1025_v35  ;;  %v1043_v40 = vld [vmem:[%s1827_s0 + $0xa0] sm:$0xf0]  ;;  %v1221_v41 = vld [vmem:[%s1827_s0 + $0x34] sm:$0xf]  ;;  %v939_v42 = vld [vmem:[%s1827_s0 + $0x38] sm:$0xf0] }
   0xc   :  { %365 = vmatpush.bf16.msra.mxu2 %v1211_v9  ;;  %v1046_v43 = vor.u32 %v1233_v39, %v1043_v40  ;;  %v942_v44 = vor.u32 %v1221_v41, %v939_v42  ;;  %v929_v45 = vld [vmem:[%s1827_s0 + $0x20] sm:$0xf]  ;;  %v1220_v46 = vld [vmem:[%s1827_s0 + $0x24] sm:$0xf0]  ;;  %v1232_v48 = vld [vmem:[%s1827_s0 + $0x8c] sm:$0xf0] }
   0xd   :  { %v1033_v47 = vld [vmem:[%s1827_s0 + $0x88] sm:$0xf]  ;;  %v930_v49 = vor.u32 %v1220_v46, %v929_v45  ;;  %v1235_v51 = vld [vmem:[%s1827_s0 + $0xac] sm:$0xf]  ;;  %v1051_v52 = vld [vmem:[%s1827_s0 + $0xb0] sm:$0xf0] }
   0xe   :  { %185 = vmatpush.bf16.msra.mxu0 %v1210_v10  ;;  %v1034_v50 = vor.u32 %v1232_v48, %v1033_v47  ;;  %v1223_v53 = vld [vmem:[%s1827_s0 + $0x44] sm:$0xf]  ;;  %v947_v54 = vld [vmem:[%s1827_s0 + $0x48] sm:$0xf0]  ;;  %v1054_v55 = vor.u32 %v1235_v51, %v1051_v52  ;;  %v937_v57 = vld [vmem:[%s1827_s0 + $0x30] sm:$0xf] }
   0xf   :  { %559 = vmatpush.bf16.msrb.mxu1 %v1211_v9  ;;  %v950_v56 = vor.u32 %v1223_v53, %v947_v54  ;;  %v1222_v58 = vld [vmem:[%s1827_s0 + $0x34] sm:$0xf0]  ;;  %v1234_v60 = vld [vmem:[%s1827_s0 + $0x9c] sm:$0xf0]  ;;  %v1237_v63 = vld [vmem:[%s1827_s0 + $0xbc] sm:$0xf] }
  0x10   :  { %366 = vmatpush.bf16.msra.mxu2 %v1210_v10  ;;  %v1041_v59 = vld [vmem:[%s1827_s0 + $0x98] sm:$0xf]  ;;  %v938_v61 = vor.u32 %v1222_v58, %v937_v57  ;;  %v955_v2 = vld [vmem:[%s1827_s0 + $0x58] sm:$0xf0]  ;;  %v1224_v6 = vld [vmem:[%s1827_s0 + $0x44] sm:$0xf0] }
  0x11   :  { %v1042_v62 = vor.u32 %v1234_v60, %v1041_v59  ;;  %v1049_v7 = vld [vmem:[%s1827_s0 + $0xa8] sm:$0xf]  ;;  %v1236_v8 = vld [vmem:[%s1827_s0 + $0xac] sm:$0xf0]  ;;  %v1239_v23 = vld [vmem:[%s1827_s0 + $0xd4] sm:$0xf] }
  0x12   :  { %186 = vmatpush.bf16.msra.mxu0 %v1209_v11  ;;  %v1050_v12 = vor.u32 %v1236_v8, %v1049_v7  ;;  %v1087_v24 = vld [vmem:[%s1827_s0 + $0xd8] sm:$0xf0]  ;;  %v1241_v33 = vld [vmem:[%s1827_s0 + $0xe4] sm:$0xf]  ;;  %v1095_v34 = vld [vmem:[%s1827_s0 + $0xe8] sm:$0xf0] }
  0x13   :  { %560 = vmatpush.bf16.msrb.mxu1 %v1210_v10  ;;  %v1090_v27 = vor.u32 %v1239_v23, %v1087_v24  ;;  %v1093_v35 = vld [vmem:[%s1827_s0 + $0xe0] sm:$0xf]  ;;  %v1242_v36 = vld [vmem:[%s1827_s0 + $0xe4] sm:$0xf0]  ;;  %v1153_v41 = vld [vmem:[%s1827_s0 + $0x138] sm:$0xf] }
  0x14   :  { %367 = vmatpush.bf16.msra.mxu2 %v1209_v11  ;;  %v1252_v42 = vld [vmem:[%s1827_s0 + $0x13c] sm:$0xf0]  ;;  %v1243_v48 = vld [vmem:[%s1827_s0 + $0xf4] sm:$0xf]  ;;  %v1244_v51 = vld [vmem:[%s1827_s0 + $0xf4] sm:$0xf0] }
  0x15   :  { %v1154_v46 = vor.u32 %v1252_v42, %v1153_v41  ;;  %v1161_v57 = vld [vmem:[%s1827_s0 + $0x148] sm:$0xf]  ;;  %v1254_v58 = vld [vmem:[%s1827_s0 + $0x14c] sm:$0xf0]  ;;  %v1253_v59 = vld [vmem:[%s1827_s0 + $0x14c] sm:$0xf] }
  0x16   :  { %1064 = vmatmul.msk.bf16.gmra.mxu3 %vm160_vm0, %v1030_v16  ;;  %187 = vmatpush.bf16.msra.mxu0 %v1208_v17  ;;  %v1163_v60 = vld [vmem:[%s1827_s0 + $0x150] sm:$0xf0]  ;;  %v1177_v42 = vld [vmem:[%s1827_s0 + $0x168] sm:$0xf] }
  0x17   :  { %561 = vmatpush.bf16.msrb.mxu1 %v1209_v11 }
  0x18   :  { %368 = vmatpush.bf16.msra.mxu2 %v1208_v17  ;;  %996 = vmatmul.msk.bf16.gmra.mxu1 %vm160_vm0, %v926_v18  ;;  %v1226_v18 = vld [vmem:[%s1827_s0 + $0x54] sm:$0xf0] }
  0x1a   :  { %188 = vmatpush.bf16.msra.mxu0 %v1207_v19 }
  0x1b   :  { %562 = vmatpush.bf16.msrb.mxu1 %v1208_v17 }
  0x1c   :  { %369 = vmatpush.bf16.msra.mxu2 %v1207_v19 }
  0x1e   :  { %189 = vmatpush.bf16.msra.mxu0 %v1206_v20 }
  0x1f   :  { %563 = vmatpush.bf16.msrb.mxu1 %v1207_v19 }
  0x20   :  { %370 = vmatpush.bf16.msra.mxu2 %v1206_v20 }
  0x21   :  { %190 = vmatmul.bf16.vlgmr.msra.gmra.mxu0 %v914_v25  ;;  %v1085_v25 = vld [vmem:[%s1827_s0 + $0xd0] sm:$0xf] }
  0x22   :  { %751 = vmatpush.bf16.msrb.mxu0 %v1213_v0  ;;  %v1059_v0 = vld [vmem:[%s1827_s0 + $0xc0] sm:$0xf0] }
  0x23   :  { %564 = vmatpush.bf16.msrb.mxu1 %v1206_v20  ;;  %371 = vmatmul.bf16.vlgmr.msra.gmra.mxu2 %v1018_v26  ;;  %v1062_v3 = vor.u32 %v1237_v63, %v1059_v0  ;;  %v1240_v26 = vld [vmem:[%s1827_s0 + $0xd4] sm:$0xf0]  ;;  %v1166_v0 = vor.u32 %v1253_v59, %v1163_v60 }
  0x24   :  { %801 = vmatpush.bf16.msrb.mxu2 %v1214_v1  ;;  %v1225_v1 = vld [vmem:[%s1827_s0 + $0x54] sm:$0xf]  ;;  %v1086_v28 = vor.u32 %v1240_v26, %v1085_v25 }
  0x25   :  { %v958_v4 = vor.u32 %v1225_v1, %v955_v2  ;;  %v1245_v2 = vld [vmem:[%s1827_s0 + $0x104] sm:$0xf] }
  0x26   :  { %752 = vmatpush.bf16.msrb.mxu0 %v1212_v5  ;;  %1065 = vmatmul.msk.bf16.gmra.mxu3 %vm160_vm0, %v1038_v31  ;;  %v945_v5 = vld [vmem:[%s1827_s0 + $0x40] sm:$0xf] }
  0x28   :  { %997 = vmatmul.msk.bf16.gmra.mxu1 %vm160_vm0, %v934_v32 }
  0x2a   :  { %753 = vmatpush.bf16.msrb.mxu0 %v1211_v9  ;;  %v1014_v9 = vld [vmem:[%s1827_s0 + $0xc8] sm:$0xff] }
  0x2b   :  { %v320_v13 = vunpack.c.h.b16 %v1014_v9  ;;  %v319_v30 = vunpack.c.l.b16 %v1014_v9 }
  0x2d   :  { %v334_v15 = vpack.c.b16 %v320_v13, %v320_v13  ;;  %v333_v32 = vpack.c.b16 %v319_v30, %v319_v30  ;;  %v1117_v30 = vld [vmem:[%s1827_s0 + $0x110] sm:$0xf] }
  0x2e   :  { %754 = vmatpush.bf16.msrb.mxu0 %v1210_v10  ;;  %v45_v10 = vld [vmem:[%s1827_s0 + $0x60] sm:$0xff] }
  0x2f   :  { %v84_v14 = vunpack.c.h.b16 %v45_v10  ;;  %v83_v29 = vunpack.c.l.b16 %v45_v10 }
  0x31   :  { %195 = vmatmul.bf16.gmra.mxu0 %v922_v37  ;;  %v98_v16 = vpack.c.b16 %v84_v14, %v84_v14  ;;  %v97_v31 = vpack.c.b16 %v83_v29, %v83_v29  ;;  %v1098_v37 = vor.u32 %v1241_v33, %v1095_v34 }
  0x32   :  { %755 = vmatpush.bf16.msrb.mxu0 %v1209_v11  ;;  %v946_v11 = vor.u32 %v1224_v6, %v945_v5  ;;  %v1246_v5 = vld [vmem:[%s1827_s0 + $0x104] sm:$0xf0] }
  0x33   :  { %376 = vmatmul.bf16.gmra.mxu2 %v1026_v38  ;;  %v1094_v38 = vor.u32 %v1242_v36, %v1093_v35 }
  0x36   :  { %756 = vmatpush.bf16.msrb.mxu0 %v1208_v17  ;;  %1066 = vmatmul.msk.bf16.gmra.mxu3 %vm160_vm0, %v1046_v43  ;;  %v953_v17 = vld [vmem:[%s1827_s0 + $0x50] sm:$0xf]  ;;  %v1251_v43 = vld [vmem:[%s1827_s0 + $0x13c] sm:$0xf] }
  0x37   :  { %v954_v21 = vor.u32 %v1226_v18, %v953_v17  ;;  %v1256_v17 = vld [vmem:[%s1827_s0 + $0x15c] sm:$0xf0]  ;;  %v1255_v18 = vld [vmem:[%s1827_s0 + $0x15c] sm:$0xf] }
  0x38   :  { %998 = vmatmul.msk.bf16.gmra.mxu1 %vm160_vm0, %v942_v44  ;;  %v1155_v44 = vld [vmem:[%s1827_s0 + $0x140] sm:$0xf0] }
  0x39   :  { %v1158_v47 = vor.u32 %v1251_v43, %v1155_v44  ;;  %v1258_v43 = vld [vmem:[%s1827_s0 + $0x16c] sm:$0xf0]  ;;  %v1257_v44 = vld [vmem:[%s1827_s0 + $0x16c] sm:$0xf] }
  0x3a   :  { %757 = vmatpush.bf16.msrb.mxu0 %v1207_v19  ;;  %v1057_v19 = vld [vmem:[%s1827_s0 + $0xb8] sm:$0xf] }
  0x3e   :  { %758 = vmatpush.bf16.msrb.mxu0 %v1206_v20  ;;  %v1238_v20 = vld [vmem:[%s1827_s0 + $0xbc] sm:$0xf0] }
  0x3f   :  { %v1058_v22 = vor.u32 %v1238_v20, %v1057_v19  ;;  %v1171_v19 = vld [vmem:[%s1827_s0 + $0x160] sm:$0xf0] }
  0x40   :  { %v1174_v25 = vor.u32 %v1255_v18, %v1171_v19 }
  0x41   :  { %200 = vmatmul.bf16.gmra.mxu0 %v930_v49  ;;  %v1103_v49 = vld [vmem:[%s1827_s0 + $0xf8] sm:$0xf0] }
  0x42   :  { %v1106_v53 = vor.u32 %v1243_v48, %v1103_v49  ;;  %v1178_v48 = vor.u32 %v1258_v43, %v1177_v42  ;;  %v1195_v42 = vld [vmem:[%s1827_s0 + $0x190] sm:$0xf0] }
  0x43   :  { %381 = vmatmul.bf16.gmra.mxu2 %v1034_v50  ;;  %v1101_v50 = vld [vmem:[%s1827_s0 + $0xf0] sm:$0xf] }
  0x44   :  { %v1102_v54 = vor.u32 %v1244_v51, %v1101_v50 }
  0x46   :  { %1067 = vmatmul.msk.bf16.gmra.mxu3 %vm160_vm0, %v1054_v55 }
  0x48   :  { %999 = vmatmul.msk.bf16.gmra.mxu1 %vm160_vm0, %v950_v56 }
  0x51   :  { %205 = vmatmul.bf16.gmra.mxu0 %v938_v61 }
  0x53   :  { %386 = vmatmul.bf16.gmra.mxu2 %v1042_v62  ;;  %v1162_v62 = vor.u32 %v1254_v58, %v1161_v57  ;;  %v1250_v57 = vld [vmem:[%s1827_s0 + $0x124] sm:$0xf0] }
  0x56   :  { %1068 = vmatmul.msk.bf16.gmra.mxu3 %vm160_vm0, %v1062_v3  ;;  %v1111_v3 = vld [vmem:[%s1827_s0 + $0x108] sm:$0xf0] }
  0x57   :  { %v1114_v7 = vor.u32 %v1245_v2, %v1111_v3 }
  0x58   :  { %1000 = vmatmul.msk.bf16.gmra.mxu1 %vm160_vm0, %v958_v4  ;;  %v1109_v4 = vld [vmem:[%s1827_s0 + $0x100] sm:$0xf] }
  0x59   :  { %v1110_v8 = vor.u32 %v1246_v5, %v1109_v4  ;;  %v1185_v5 = vld [vmem:[%s1827_s0 + $0x178] sm:$0xf] }
  0x61   :  { %210 = vmatmul.bf16.gmra.mxu0 %v946_v11 }
  0x63   :  { %391 = vmatmul.bf16.gmra.mxu2 %v1050_v12 }
  0x66   :  { %1069 = vmatmul.msk.bf16.gmra.mxu3 %vm160_vm0, %v334_v15 }
  0x68   :  { %1001 = vmatmul.msk.bf16.gmra.mxu1 %vm160_vm0, %v98_v16  ;;  %v1169_v16 = vld [vmem:[%s1827_s0 + $0x158] sm:$0xf] }
  0x71   :  { %215 = vmatmul.bf16.gmra.mxu0 %v954_v21 }
  0x73   :  { %396 = vmatmul.bf16.gmra.mxu2 %v1058_v22  ;;  %v1170_v22 = vor.u32 %v1256_v17, %v1169_v16 }
  0x76   :  { %1131 = vmatmul.msk.bf16.vlgmr.msrb.gmra.mxu3 %vm160_vm0, %v1090_v27  ;;  %v1247_v27 = vld [vmem:[%s1827_s0 + $0x114] sm:$0xf] }
  0x78   :  { %565 = vmatmul.bf16.vlgmr.msrb.gmra.mxu1 %v1086_v28  ;;  %v1119_v28 = vld [vmem:[%s1827_s0 + $0x118] sm:$0xf0] }
  0x79   :  { %v1122_v33 = vor.u32 %v1247_v27, %v1119_v28 }
  0x81   :  { %220 = vmatmul.bf16.gmra.mxu0 %v97_v31  ;;  %v1248_v31 = vld [vmem:[%s1827_s0 + $0x114] sm:$0xf0] }
  0x82   :  { %v1118_v34 = vor.u32 %v1248_v31, %v1117_v30 }
  0x83   :  { %401 = vmatmul.bf16.gmra.mxu2 %v333_v32 }
  0x85   :  { %v234_v39 = vpop.f32.mrf.mxu1 }
  0x86   :  { %1132 = vmatmul.msk.bf16.gmra.mxu3 %vm160_vm0, %v1098_v37 }
  0x88   :  { %570 = vmatmul.bf16.gmra.mxu1 %v1094_v38 }
  0x89   :  { %v415_v40 = vpop.f32.mrf.mxu3 }
  0x8d   :  { %v236_v45 = vpop.f32.mrf.mxu1 }
  0x91   :  { %v417_v52 = vpop.f32.mrf.mxu3  ;;  %759 = vmatmul.bf16.vlgmr.msrb.gmra.mxu0 %v1154_v46 }
  0x93   :  { %1199 = vmatmul.msk.bf16.vlgmr.msrb.gmra.mxu2 %vm160_vm0, %v1158_v47 }
  0x95   :  { %v239_v55 = vpop.f32.mrf.mxu1 }
  0x96   :  { %1133 = vmatmul.msk.bf16.gmra.mxu3 %vm160_vm0, %v1106_v53  ;;  %v1249_v53 = vld [vmem:[%s1827_s0 + $0x124] sm:$0xf] }
  0x98   :  { %575 = vmatmul.bf16.gmra.mxu1 %v1102_v54  ;;  %v1127_v54 = vld [vmem:[%s1827_s0 + $0x128] sm:$0xf0] }
  0x99   :  { %v420_v56 = vpop.f32.mrf.mxu3  ;;  %v1130_v59 = vor.u32 %v1249_v53, %v1127_v54 }
  0x9d   :  { %v241_v61 = vpop.f32.mrf.mxu1 }
  0x9e   :  { %v191_v63 = vpop.f32.mrf.mxu0 }
  0x9f   :  { %v1539_v1 = vadd.f32 %v234_v39, %v191_v63 }
  0xa1   :  { %v422_v6 = vpop.f32.mrf.mxu3  ;;  %764 = vmatmul.bf16.gmra.mxu0 %v1162_v62 }
  0xa3   :  { %1200 = vmatmul.msk.bf16.gmra.mxu2 %vm160_vm0, %v1166_v0 }
  0xa5   :  { %v244_v9 = vpop.f32.mrf.mxu1 }
  0xa6   :  { %v372_v10 = vpop.f32.mrf.mxu2  ;;  %1134 = vmatmul.msk.bf16.gmra.mxu3 %vm160_vm0, %v1114_v7  ;;  %v193_v12 = vpop.f32.mrf.mxu0  ;;  %v1259_v7 = vld [vmem:[%s1827_s0 + $0x17c] sm:$0xf] }
  0xa7   :  { %v1554_v11 = vadd.f32 %v415_v40, %v372_v10  ;;  %v1557_v13 = vadd.f32 %v236_v45, %v193_v12  ;;  %v1179_v45 = vld [vmem:[%s1827_s0 + $0x170] sm:$0xf0] }
  0xa8   :  { %580 = vmatmul.bf16.gmra.mxu1 %v1110_v8  ;;  %v1182_v51 = vor.u32 %v1257_v44, %v1179_v45  ;;  %v1187_v8 = vld [vmem:[%s1827_s0 + $0x180] sm:$0xf0] }
  0xa9   :  { %v449_v14 = vmax.f32 %v1539_v1, %v1554_v11  ;;  %v425_v15 = vpop.f32.mrf.mxu3  ;;  %v1190_v18 = vor.u32 %v1259_v7, %v1187_v8 }
  0xad   :  { %v246_v20 = vpop.f32.mrf.mxu1 }
  0xae   :  { %v374_v21 = vpop.f32.mrf.mxu2  ;;  %v196_v24 = vpop.f32.mrf.mxu0 }
  0xaf   :  { %v1573_v23 = vadd.f32 %v417_v52, %v374_v21  ;;  %v1575_v26 = vadd.f32 %v239_v55, %v196_v24 }
  0xb1   :  { %v450_v29 = vmax.f32 %v1557_v13, %v1573_v23  ;;  %v427_v32 = vpop.f32.mrf.mxu3  ;;  %769 = vmatmul.bf16.gmra.mxu0 %v1170_v22 }
  0xb3   :  { %1201 = vmatmul.msk.bf16.gmra.mxu2 %vm160_vm0, %v1174_v25 }
  0xb5   :  { %v249_v35 = vpop.f32.mrf.mxu1 }
  0xb6   :  { %v377_v36 = vpop.f32.mrf.mxu2  ;;  %1135 = vmatmul.msk.bf16.gmra.mxu3 %vm160_vm0, %v1122_v33  ;;  %v198_v38 = vpop.f32.mrf.mxu0 }
  0xb7   :  { %v1592_v37 = vadd.f32 %v420_v56, %v377_v36  ;;  %v1595_v39 = vadd.f32 %v241_v61, %v198_v38  ;;  %v1125_v56 = vld [vmem:[%s1827_s0 + $0x120] sm:$0xf]  ;;  %v1193_v36 = vld [vmem:[%s1827_s0 + $0x188] sm:$0xf]  ;;  %v1262_v38 = vld [vmem:[%s1827_s0 + $0x18c] sm:$0xf0] }
  0xb8   :  { %585 = vmatmul.bf16.gmra.mxu1 %v1118_v34  ;;  %v1126_v60 = vor.u32 %v1250_v57, %v1125_v56  ;;  %v1194_v45 = vor.u32 %v1262_v38, %v1193_v36 }
  0xb9   :  { %v451_v40 = vmax.f32 %v1575_v26, %v1592_v37  ;;  %v430_v41 = vpop.f32.mrf.mxu3 }
  0xbd   :  { %v251_v46 = vpop.f32.mrf.mxu1 }
  0xbe   :  { %v379_v47 = vpop.f32.mrf.mxu2  ;;  %v201_v50 = vpop.f32.mrf.mxu0 }
  0xbf   :  { %v1611_v49 = vadd.f32 %v422_v6, %v379_v47  ;;  %v1613_v52 = vadd.f32 %v244_v9, %v201_v50  ;;  %v1260_v6 = vld [vmem:[%s1827_s0 + $0x17c] sm:$0xf0]  ;;  %v1082_v9 = vld [vmem:[%s1827_s0 + $0x130] sm:$0xff] }
  0xc0   :  { %v514_v19 = vunpack.c.h.b16 %v1082_v9  ;;  %v513_v21 = vunpack.c.l.b16 %v1082_v9 }
  0xc1   :  { %v452_v55 = vmax.f32 %v1595_v39, %v1611_v49  ;;  %v432_v58 = vpop.f32.mrf.mxu3  ;;  %774 = vmatmul.bf16.gmra.mxu0 %v1178_v48 }
  0xc2   :  { %v528_v25 = vpack.c.b16 %v514_v19, %v514_v19  ;;  %v527_v27 = vpack.c.b16 %v513_v21, %v513_v21 }
  0xc3   :  { %1202 = vmatmul.msk.bf16.gmra.mxu2 %vm160_vm0, %v1182_v51 }
  0xc5   :  { %v254_v61 = vpop.f32.mrf.mxu1 }
  0xc6   :  { %v382_v62 = vpop.f32.mrf.mxu2  ;;  %1136 = vmatmul.msk.bf16.gmra.mxu3 %vm160_vm0, %v1130_v59  ;;  %v203_v0 = vpop.f32.mrf.mxu0 }
  0xc7   :  { %v1630_v63 = vadd.f32 %v425_v15, %v382_v62  ;;  %v1633_v2 = vadd.f32 %v246_v20, %v203_v0  ;;  %v1186_v15 = vor.u32 %v1260_v6, %v1185_v5 }
  0xc8   :  { %590 = vmatmul.bf16.gmra.mxu1 %v1126_v60 }
  0xc9   :  { %v453_v3 = vmax.f32 %v1613_v52, %v1630_v63  ;;  %v435_v4 = vpop.f32.mrf.mxu3 }
  0xcd   :  { %v256_v10 = vpop.f32.mrf.mxu1 }
  0xce   :  { %v384_v12 = vpop.f32.mrf.mxu2  ;;  %v206_v17 = vpop.f32.mrf.mxu0 }
  0xcf   :  { %v1652_v16 = vadd.f32 %v427_v32, %v384_v12  ;;  %v1654_v20 = vadd.f32 %v249_v35, %v206_v17 }
  0xd1   :  { %v454_v22 = vmax.f32 %v1633_v2, %v1652_v16  ;;  %v437_v24 = vpop.f32.mrf.mxu3  ;;  %779 = vmatmul.bf16.gmra.mxu0 %v1186_v15 }
  0xd3   :  { %1203 = vmatmul.msk.bf16.gmra.mxu2 %vm160_vm0, %v1190_v18 }
  0xd5   :  { %v259_v28 = vpop.f32.mrf.mxu1 }
  0xd6   :  { %v387_v30 = vpop.f32.mrf.mxu2  ;;  %1137 = vmatmul.msk.bf16.gmra.mxu3 %vm160_vm0, %v528_v25  ;;  %v208_v32 = vpop.f32.mrf.mxu0 }
  0xd7   :  { %v1659_v31 = vadd.f32 %v430_v41, %v387_v30  ;;  %v1662_v33 = vadd.f32 %v251_v46, %v208_v32  ;;  %v1261_v41 = vld [vmem:[%s1827_s0 + $0x18c] sm:$0xf] }
  0xd8   :  { %595 = vmatmul.bf16.gmra.mxu1 %v527_v27  ;;  %v1198_v48 = vor.u32 %v1261_v41, %v1195_v42 }
  0xd9   :  { %v455_v34 = vmax.f32 %v1654_v20, %v1659_v31  ;;  %v440_v35 = vpop.f32.mrf.mxu3 }
  0xdd   :  { %v261_v43 = vpop.f32.mrf.mxu1 }
  0xde   :  { %v389_v44 = vpop.f32.mrf.mxu2  ;;  %v211_v47 = vpop.f32.mrf.mxu0 }
  0xdf   :  { %v1678_v46 = vadd.f32 %v432_v58, %v389_v44  ;;  %v1680_v50 = vadd.f32 %v254_v61, %v211_v47  ;;  %v1150_v58 = vld [vmem:[%s1827_s0 + $0x198] sm:$0xff] }
  0xe0   :  { %v707_v0 = vunpack.c.l.b16 %v1150_v58  ;;  %v708_v5 = vunpack.c.h.b16 %v1150_v58 }
  0xe1   :  { %v456_v51 = vmax.f32 %v1662_v33, %v1678_v46  ;;  %v442_v53 = vpop.f32.mrf.mxu3  ;;  %784 = vmatmul.bf16.gmra.mxu0 %v1194_v45 }
  0xe2   :  { %v721_v8 = vpack.c.b16 %v707_v0, %v707_v0  ;;  %v722_v12 = vpack.c.b16 %v708_v5, %v708_v5 }
  0xe3   :  { %1204 = vmatmul.msk.bf16.gmra.mxu2 %vm160_vm0, %v1198_v48 }
  0xe5   :  { %v264_v54 = vpop.f32.mrf.mxu1 }
  0xe6   :  { %v392_v56 = vpop.f32.mrf.mxu2  ;;  %v213_v59 = vpop.f32.mrf.mxu0 }
  0xe7   :  { %v1685_v57 = vadd.f32 %v435_v4, %v392_v56  ;;  %v1690_v60 = vadd.f32 %v256_v10, %v213_v59 }
  0xe9   :  { %v457_v61 = vmax.f32 %v1680_v50, %v1685_v57  ;;  %v445_v62 = vpop.f32.mrf.mxu3 }
  0xed   :  { %v266_v6 = vpop.f32.mrf.mxu1 }
  0xee   :  { %v394_v7 = vpop.f32.mrf.mxu2  ;;  %v216_v4 = vpop.f32.mrf.mxu0 }
  0xef   :  { %v1694_v9 = vadd.f32 %v437_v24, %v394_v7  ;;  %v1696_v15 = vadd.f32 %v259_v28, %v216_v4 }
  0xf1   :  { %v458_v17 = vmax.f32 %v1690_v60, %v1694_v9  ;;  %v447_v10 = vpop.f32.mrf.mxu3  ;;  %789 = vmatmul.bf16.gmra.mxu0 %v721_v8 }
  0xf3   :  { %1205 = vmatmul.msk.bf16.gmra.mxu2 %vm160_vm0, %v722_v12 }
  0xf5   :  { %v566_v18 = vpop.f32.mrf.mxu1 }
  0xf6   :  { %v397_v19 = vpop.f32.mrf.mxu2  ;;  %v218_v25 = vpop.f32.mrf.mxu0 }
  0xf7   :  { %v1701_v21 = vadd.f32 %v440_v35, %v397_v19  ;;  %v1703_v27 = vadd.f32 %v261_v43, %v218_v25 }
  0xf9   :  { %v459_v24 = vmax.f32 %v1696_v15, %v1701_v21  ;;  %v609_v30 = vpop.f32.mrf.mxu3 }
  0xfa   :  { %v610_v5 = vadd.f32 %v609_v30, %v566_v18 }
  0xfc   :  { %v643_v7 = vmax.f32 %v449_v14, %v610_v5 }
  0xfd   :  { %v568_v28 = vpop.f32.mrf.mxu1 }
  0xfe   :  { %v399_v32 = vpop.f32.mrf.mxu2  ;;  %v221_v38 = vpop.f32.mrf.mxu0 }
  0xff   :  { %v1707_v36 = vadd.f32 %v442_v53, %v399_v32  ;;  %v1709_v41 = vadd.f32 %v264_v54, %v221_v38 }
 0x101   :  { %v460_v42 = vmax.f32 %v1703_v27, %v1707_v36  ;;  %v611_v44 = vpop.f32.mrf.mxu3 }
 0x102   :  { %v612_v19 = vadd.f32 %v611_v44, %v568_v28 }
 0x104   :  { %v644_v1 = vmax.f32 %v450_v29, %v612_v19 }
 0x105   :  { %v571_v35 = vpop.f32.mrf.mxu1 }
 0x106   :  { %v402_v45 = vpop.f32.mrf.mxu2  ;;  %v223_v43 = vpop.f32.mrf.mxu0 }
 0x107   :  { %v1713_v47 = vadd.f32 %v445_v62, %v402_v45  ;;  %v1723_v62 = vld [vmem:[%s1828_s2] ss:$0 sm:$0xff] }
 0x109   :  { %v461_v48 = vmax.f32 %v1709_v41, %v1713_v47  ;;  %v614_v56 = vpop.f32.mrf.mxu3 }
 0x10a   :  { %v615_v44 = vadd.f32 %v614_v56, %v571_v35 }
 0x10c   :  { %v645_v13 = vmax.f32 %v451_v40, %v615_v44 }
 0x10d   :  { %v573_v59 = vpop.f32.mrf.mxu1 }
 0x10e   :  { %v404_v58 = vpop.f32.mrf.mxu2  ;;  %v760_v53 = vpop.f32.mrf.mxu0 }
 0x111   :  { %v616_v0 = vpop.f32.mrf.mxu3 }
 0x112   :  { %v617_v35 = vadd.f32 %v616_v0, %v573_v59 }
 0x114   :  { %v646_v26 = vmax.f32 %v452_v55, %v617_v35 }
 0x115   :  { %v576_v54 = vpop.f32.mrf.mxu1 }
 0x116   :  { %v803_v6 = vpop.f32.mrf.mxu2  ;;  %v762_v4 = vpop.f32.mrf.mxu0 }
 0x117   :  { %v804_v8 = vadd.f32 %v803_v6, %v760_v53 }
 0x119   :  { %v837_v12 = vmax.f32 %v643_v7, %v804_v8  ;;  %v619_v10 = vpop.f32.mrf.mxu3 }
 0x11a   :  { %v620_v59 = vadd.f32 %v619_v10, %v576_v54 }
 0x11b   :  { %v854_v25 = vadd.f32 %v1723_v62, %v837_v12 }
 0x11c   :  { %v647_v39 = vmax.f32 %v453_v3, %v620_v59 }
 0x11d   :  { %v867_v32 = vmax.f32 %v854_v25, 0.0  ;;  %v578_v18 = vpop.f32.mrf.mxu1 }
 0x11e   :  { %v805_v30 = vpop.f32.mrf.mxu2  ;;  %v765_v38 = vpop.f32.mrf.mxu0 }
 0x11f   :  { %v880_v11 = vpack.c.bf16 %v867_v32, %v867_v32  ;;  %v806_v14 = vadd.f32 %v805_v30, %v762_v4 }
 0x121   :  { %894 = vst.msk [vmem:[%s1829_s3] sm:$0xf] %vm893_vm1, %v880_v11  ;;  %v838_v45 = vmax.f32 %v644_v1, %v806_v14  ;;  %v621_v28 = vpop.f32.mrf.mxu3 }
 0x122   :  { %v622_v54 = vadd.f32 %v621_v28, %v578_v18 }
 0x123   :  { %v855_v43 = vadd.f32 %v1723_v62, %v838_v45 }
 0x124   :  { %v648_v52 = vmax.f32 %v454_v22, %v622_v54 }
 0x125   :  { %v868_v58 = vmax.f32 %v855_v43, 0.0  ;;  %v581_v53 = vpop.f32.mrf.mxu1 }
 0x126   :  { %v808_v5 = vpop.f32.mrf.mxu2  ;;  %v767_v6 = vpop.f32.mrf.mxu0 }
 0x127   :  { %v881_v23 = vpack.c.bf16 %v868_v58, %v868_v58  ;;  %v809_v29 = vadd.f32 %v808_v5, %v765_v38 }
 0x129   :  { %895 = vst.msk [vmem:[%s1829_s3 + $0x4] sm:$0xf] %vm893_vm1, %v881_v23  ;;  %v839_v7 = vmax.f32 %v645_v13, %v809_v29  ;;  %v624_v8 = vpop.f32.mrf.mxu3 }
 0x12a   :  { %v625_v18 = vadd.f32 %v624_v8, %v581_v53 }
 0x12b   :  { %v856_v56 = vadd.f32 %v1723_v62, %v839_v7 }
 0x12c   :  { %v649_v2 = vmax.f32 %v455_v34, %v625_v18 }
 0x12d   :  { %v869_v4 = vmax.f32 %v856_v56, 0.0  ;;  %v583_v12 = vpop.f32.mrf.mxu1 }
 0x12e   :  { %v810_v19 = vpop.f32.mrf.mxu2  ;;  %v770_v25 = vpop.f32.mrf.mxu0 }
 0x12f   :  { %v882_v37 = vpack.c.bf16 %v869_v4, %v869_v4  ;;  %v811_v40 = vadd.f32 %v810_v19, %v767_v6 }
 0x131   :  { %896 = vst.msk [vmem:[%s1829_s3 + $0x8] sm:$0xf] %vm893_vm1, %v882_v37  ;;  %v840_v32 = vmax.f32 %v646_v26, %v811_v40  ;;  %v626_v30 = vpop.f32.mrf.mxu3 }
 0x132   :  { %v627_v53 = vadd.f32 %v626_v30, %v583_v12 }
 0x133   :  { %v857_v0 = vadd.f32 %v1723_v62, %v840_v32 }
 0x134   :  { %v650_v20 = vmax.f32 %v456_v51, %v627_v53 }
 0x135   :  { %v870_v1 = vmax.f32 %v857_v0, 0.0  ;;  %v586_v11 = vpop.f32.mrf.mxu1 }
 0x136   :  { %v813_v14 = vpop.f32.mrf.mxu2  ;;  %v772_v38 = vpop.f32.mrf.mxu0 }
 0x137   :  { %v883_v49 = vpack.c.bf16 %v870_v1, %v870_v1  ;;  %v814_v55 = vadd.f32 %v813_v14, %v770_v25 }
 0x139   :  { %897 = vst.msk [vmem:[%s1829_s3 + $0xc] sm:$0xf] %vm893_vm1, %v883_v49  ;;  %v841_v45 = vmax.f32 %v647_v39, %v814_v55  ;;  %v629_v44 = vpop.f32.mrf.mxu3 }
 0x13a   :  { %v630_v12 = vadd.f32 %v629_v44, %v586_v11 }
 0x13b   :  { %v858_v10 = vadd.f32 %v1723_v62, %v841_v45 }
 0x13c   :  { %v651_v33 = vmax.f32 %v457_v61, %v630_v12 }
 0x13d   :  { %v871_v43 = vmax.f32 %v858_v10, 0.0  ;;  %v588_v58 = vpop.f32.mrf.mxu1 }
 0x13e   :  { %v815_v5 = vpop.f32.mrf.mxu2  ;;  %v775_v13 = vpop.f32.mrf.mxu0 }
 0x13f   :  { %v884_v63 = vpack.c.bf16 %v871_v43, %v871_v43  ;;  %v816_v3 = vadd.f32 %v815_v5, %v772_v38 }
 0x141   :  { %898 = vst.msk [vmem:[%s1829_s3 + $0x10] sm:$0xf] %vm893_vm1, %v884_v63  ;;  %v842_v23 = vmax.f32 %v648_v52, %v816_v3  ;;  %v631_v29 = vpop.f32.mrf.mxu3 }
 0x142   :  { %v632_v11 = vadd.f32 %v631_v29, %v588_v58 }
 0x143   :  { %v859_v28 = vadd.f32 %v1723_v62, %v842_v23 }
 0x144   :  { %v652_v50 = vmax.f32 %v458_v17, %v632_v11 }
 0x145   :  { %v872_v6 = vmax.f32 %v859_v28, 0.0  ;;  %v591_v7 = vpop.f32.mrf.mxu1 }
 0x146   :  { %v818_v35 = vpop.f32.mrf.mxu2  ;;  %v777_v56 = vpop.f32.mrf.mxu0 }
 0x147   :  { %v885_v16 = vpack.c.bf16 %v872_v6, %v872_v6  ;;  %v819_v22 = vadd.f32 %v818_v35, %v775_v13 }
 0x149   :  { %899 = vst.msk [vmem:[%s1829_s3 + $0x14] sm:$0xf] %vm893_vm1, %v885_v16  ;;  %v843_v4 = vmax.f32 %v649_v2, %v819_v22  ;;  %v634_v19 = vpop.f32.mrf.mxu3 }
 0x14a   :  { %v635_v58 = vadd.f32 %v634_v19, %v591_v7 }
 0x14b   :  { %v860_v8 = vadd.f32 %v1723_v62, %v843_v4 }
 0x14c   :  { %v653_v60 = vmax.f32 %v459_v24, %v635_v58 }
 0x14d   :  { %v873_v26 = vmax.f32 %v860_v8, 0.0  ;;  %v593_v37 = vpop.f32.mrf.mxu1 }
 0x14e   :  { %v820_v40 = vpop.f32.mrf.mxu2  ;;  %v780_v25 = vpop.f32.mrf.mxu0 }
 0x14f   :  { %v886_v31 = vpack.c.bf16 %v873_v26, %v873_v26  ;;  %v821_v34 = vadd.f32 %v820_v40, %v777_v56 }
 0x151   :  { %900 = vst.msk [vmem:[%s1829_s3 + $0x18] sm:$0xf] %vm893_vm1, %v886_v31  ;;  %v844_v32 = vmax.f32 %v650_v20, %v821_v34  ;;  %v636_v59 = vpop.f32.mrf.mxu3 }
 0x152   :  { %v637_v29 = vadd.f32 %v636_v59, %v593_v37 }
 0x153   :  { %v861_v30 = vadd.f32 %v1723_v62, %v844_v32 }
 0x154   :  { %v654_v7 = vmax.f32 %v460_v42, %v637_v29 }
 0x155   :  { %v874_v0 = vmax.f32 %v861_v30, 0.0  ;;  %v596_v1 = vpop.f32.mrf.mxu1 }
 0x156   :  { %v823_v14 = vpop.f32.mrf.mxu2  ;;  %v782_v39 = vpop.f32.mrf.mxu0 }
 0x157   :  { %v887_v46 = vpack.c.bf16 %v874_v0, %v874_v0  ;;  %v824_v51 = vadd.f32 %v823_v14, %v780_v25 }
 0x159   :  { %901 = vst.msk [vmem:[%s1829_s3 + $0x1c] sm:$0xf] %vm893_vm1, %v887_v46  ;;  %v845_v49 = vmax.f32 %v651_v33, %v824_v51  ;;  %v639_v55 = vpop.f32.mrf.mxu3 }
 0x15a   :  { %v640_v2 = vadd.f32 %v639_v55, %v596_v1 }
 0x15b   :  { %v862_v38 = vadd.f32 %v1723_v62, %v845_v49 }
 0x15c   :  { %v655_v4 = vmax.f32 %v461_v48, %v640_v2 }
 0x15d   :  { %v875_v45 = vmax.f32 %v862_v38, 0.0  ;;  %v598_v44 = vpop.f32.mrf.mxu1 }
 0x15e   :  { %v825_v54 = vpop.f32.mrf.mxu2  ;;  %v785_v10 = vpop.f32.mrf.mxu0 }
 0x15f   :  { %v888_v57 = vpack.c.bf16 %v875_v45, %v875_v45  ;;  %v826_v61 = vadd.f32 %v825_v54, %v782_v39 }
 0x161   :  { %902 = vst.msk [vmem:[%s1829_s3 + $0x20] sm:$0xf] %vm893_vm1, %v888_v57  ;;  %v846_v43 = vmax.f32 %v652_v50, %v826_v61  ;;  %v641_v5 = vpop.f32.mrf.mxu3 }
 0x163   :  { %v863_v52 = vadd.f32 %v1723_v62, %v846_v43 }
 0x165   :  { %v876_v63 = vmax.f32 %v863_v52, 0.0 }
 0x166   :  { %v828_v3 = vpop.f32.mrf.mxu2  ;;  %v787_v13 = vpop.f32.mrf.mxu0 }
 0x167   :  { %v889_v9 = vpack.c.bf16 %v876_v63, %v876_v63  ;;  %v829_v17 = vadd.f32 %v828_v3, %v785_v10 }
 0x169   :  { %903 = vst.msk [vmem:[%s1829_s3 + $0x24] sm:$0xf] %vm893_vm1, %v889_v9  ;;  %v847_v23 = vmax.f32 %v653_v60, %v829_v17 }
 0x16b   :  { %v864_v18 = vadd.f32 %v1723_v62, %v847_v23 }
 0x16d   :  { %v877_v28 = vmax.f32 %v864_v18, 0.0 }
 0x16e   :  { %v830_v6 = vpop.f32.mrf.mxu2  ;;  %v790_v24 = vpop.f32.mrf.mxu0 }
 0x16f   :  { %v890_v15 = vpack.c.bf16 %v877_v28, %v877_v28  ;;  %v831_v21 = vadd.f32 %v830_v6, %v787_v13 }
 0x171   :  { %904 = vst.msk [vmem:[%s1829_s3 + $0x28] sm:$0xf] %vm893_vm1, %v890_v15  ;;  %v848_v35 = vmax.f32 %v654_v7, %v831_v21 }
 0x173   :  { %v865_v16 = vadd.f32 %v1723_v62, %v848_v35 }
 0x175   :  { %v878_v22 = vmax.f32 %v865_v16, 0.0 }
 0x176   :  { %v833_v56 = vpop.f32.mrf.mxu2  ;;  %v792_v42 = vpop.f32.mrf.mxu0 }
 0x177   :  { %v891_v27 = vpack.c.bf16 %v878_v22, %v878_v22  ;;  %v834_v36 = vadd.f32 %v833_v56, %v790_v24 }
 0x179   :  { %905 = vst.msk [vmem:[%s1829_s3 + $0x2c] sm:$0xf] %vm893_vm1, %v891_v27  ;;  %v849_v19 = vmax.f32 %v655_v4, %v834_v36 }
 0x17b   :  { %v866_v53 = vadd.f32 %v1723_v62, %v849_v19 }
 0x17d   :  { %v879_v8 = vmax.f32 %v866_v53, 0.0 }
 0x17e   :  { %v835_v26 = vpop.f32.mrf.mxu2 }
 0x17f   :  { %v892_v37 = vpack.c.bf16 %v879_v8, %v879_v8 }
 0x181   :  { %906 = vst.msk [vmem:[%s1829_s3 + $0x30] sm:$0xf] %vm893_vm1, %v892_v37 }

// kernel: mnist_convnet_forward.7
= control target key start
LH: loop header
LB: loop body
LE: loop exit
PB: predicated region body
PF: predicated region fallthrough
CT: control target
= control target key end

     0   :  { %vm327_vm0 = vcmask 523264   ;;  %vm396_vm1 = vcmask 80896   ;;  %s727_s1 = inlined_call_operand.vmem [shape: bf16[576,10], index: 1, kind: input, shape index: {}]   ;;  %s728_s2 = inlined_call_operand.vmem [shape: f32[1,10], index: 2, kind: input, shape index: {}]   ;;  %s729_s0 = inlined_call_operand.vmem [shape: bf16[8,576], index: 0, kind: input, shape index: {}]   ;;  %s730_s3 = inlined_call_operand.vmem [shape: f32[8,10], index: 3, kind: output, shape index: {}]  }
   0x1   :  { %v554_v0 = vld [vmem:[%s727_s1 + $0x38] sm:$0xff]  ;;  %v553_v4 = vld [vmem:[%s727_s1 + $0x30] sm:$0xff]  ;;  %v552_v8 = vld [vmem:[%s727_s1 + $0x28] sm:$0xff] }
   0x2   :  { %v570_v1 = vld [vmem:[%s727_s1 + $0xb8] sm:$0xff]  ;;  %331 = vmatpush.bf16.msra.mxu0 %v554_v0  ;;  %v569_v5 = vld [vmem:[%s727_s1 + $0xb0] sm:$0xff]  ;;  %v568_v9 = vld [vmem:[%s727_s1 + $0xa8] sm:$0xff] }
   0x3   :  { %v562_v2 = vld [vmem:[%s727_s1 + $0x78] sm:$0xff]  ;;  %357 = vmatpush.bf16.msra.mxu2 %v570_v1  ;;  %v561_v6 = vld [vmem:[%s727_s1 + $0x70] sm:$0xff]  ;;  %v560_v10 = vld [vmem:[%s727_s1 + $0x68] sm:$0xff] }
   0x4   :  { %v578_v3 = vld [vmem:[%s727_s1 + $0xf8] sm:$0xff]  ;;  %344 = vmatpush.bf16.msra.mxu1 %v562_v2  ;;  %v577_v7 = vld [vmem:[%s727_s1 + $0xf0] sm:$0xff]  ;;  %v576_v11 = vld [vmem:[%s727_s1 + $0xe8] sm:$0xff] }
   0x5   :  { %370 = vmatpush.bf16.msra.mxu3 %v578_v3  ;;  %v551_v12 = vld [vmem:[%s727_s1 + $0x20] sm:$0xff]  ;;  %v550_v16 = vld [vmem:[%s727_s1 + $0x18] sm:$0xff]  ;;  %v549_v20 = vld [vmem:[%s727_s1 + $0x10] sm:$0xff] }
   0x6   :  { %332 = vmatpush.bf16.msra.mxu0 %v553_v4  ;;  %v567_v13 = vld [vmem:[%s727_s1 + $0xa0] sm:$0xff]  ;;  %v566_v17 = vld [vmem:[%s727_s1 + $0x98] sm:$0xff]  ;;  %v565_v21 = vld [vmem:[%s727_s1 + $0x90] sm:$0xff] }
   0x7   :  { %358 = vmatpush.bf16.msra.mxu2 %v569_v5  ;;  %v559_v14 = vld [vmem:[%s727_s1 + $0x60] sm:$0xff]  ;;  %v558_v18 = vld [vmem:[%s727_s1 + $0x58] sm:$0xff]  ;;  %v557_v22 = vld [vmem:[%s727_s1 + $0x50] sm:$0xff] }
   0x8   :  { %345 = vmatpush.bf16.msra.mxu1 %v561_v6  ;;  %v575_v15 = vld [vmem:[%s727_s1 + $0xe0] sm:$0xff]  ;;  %v574_v19 = vld [vmem:[%s727_s1 + $0xd8] sm:$0xff]  ;;  %v573_v23 = vld [vmem:[%s727_s1 + $0xd0] sm:$0xff] }
   0x9   :  { %371 = vmatpush.bf16.msra.mxu3 %v577_v7  ;;  %v548_v24 = vld [vmem:[%s727_s1 + $0x8] sm:$0xff]  ;;  %v15_v26 = vld [vmem:[%s729_s0] sm:$0xff]  ;;  %v582_v38 = vld [vmem:[%s727_s1 + $0x118] sm:$0xff] }
   0xa   :  { %333 = vmatpush.bf16.msra.mxu0 %v552_v8  ;;  %v564_v25 = vld [vmem:[%s727_s1 + $0x88] sm:$0xff]  ;;  %v97_v30 = vunpack.c.l.b16 %v15_v26  ;;  %v547_v32 = vld [vmem:[%s727_s1] sm:$0xff]  ;;  %v98_v34 = vunpack.c.h.b16 %v15_v26  ;;  %v581_v43 = vld [vmem:[%s727_s1 + $0x110] sm:$0xff] }
   0xb   :  { %359 = vmatpush.bf16.msra.mxu2 %v568_v9  ;;  %v16_v27 = vld [vmem:[%s729_s0 + $0x8] sm:$0xff]  ;;  %v563_v33 = vld [vmem:[%s727_s1 + $0x80] sm:$0xff]  ;;  %v17_v45 = vld [vmem:[%s729_s0 + $0x10] sm:$0xf] }
   0xc   :  { %346 = vmatpush.bf16.msra.mxu1 %v560_v10  ;;  %v556_v28 = vld [vmem:[%s727_s1 + $0x48] sm:$0xff]  ;;  %v99_v31 = vunpack.c.l.b16 %v16_v27  ;;  %v100_v35 = vunpack.c.h.b16 %v16_v27  ;;  %v555_v36 = vld [vmem:[%s727_s1 + $0x40] sm:$0xff]  ;;  %v102_v39 = vpack.c.b16 %v97_v30, %v97_v30  ;;  %v103_v41 = vpack.c.b16 %v98_v34, %v98_v34 }
   0xd   :  { %372 = vmatpush.bf16.msra.mxu3 %v576_v11  ;;  %v572_v29 = vld [vmem:[%s727_s1 + $0xc8] sm:$0xff]  ;;  %v571_v37 = vld [vmem:[%s727_s1 + $0xc0] sm:$0xff]  ;;  %v101_v47 = vunpack.c.l.b16 %v17_v45 }
   0xe   :  { %334 = vmatpush.bf16.msra.mxu0 %v551_v12  ;;  %v104_v40 = vpack.c.b16 %v99_v31, %v99_v31  ;;  %v105_v42 = vpack.c.b16 %v100_v35, %v100_v35  ;;  %v580_v44 = vld [vmem:[%s727_s1 + $0x108] sm:$0xff]  ;;  %v579_v46 = vld [vmem:[%s727_s1 + $0x100] sm:$0xff] }
   0xf   :  { %360 = vmatpush.bf16.msra.mxu2 %v567_v13  ;;  %v106_v48 = vpack.c.b16 %v101_v47, %v101_v47  ;;  %v583_v50 = vld [vmem:[%s728_s2] ss:$0 sm:$0xff] }
  0x10   :  { %347 = vmatpush.bf16.msra.mxu1 %v559_v14 }
  0x11   :  { %373 = vmatpush.bf16.msra.mxu3 %v575_v15 }
  0x12   :  { %335 = vmatpush.bf16.msra.mxu0 %v550_v16 }
  0x13   :  { %361 = vmatpush.bf16.msra.mxu2 %v566_v17 }
  0x14   :  { %348 = vmatpush.bf16.msra.mxu1 %v558_v18 }
  0x15   :  { %374 = vmatpush.bf16.msra.mxu3 %v574_v19 }
  0x16   :  { %336 = vmatpush.bf16.msra.mxu0 %v549_v20 }
  0x17   :  { %362 = vmatpush.bf16.msra.mxu2 %v565_v21 }
  0x18   :  { %349 = vmatpush.bf16.msra.mxu1 %v557_v22 }
  0x19   :  { %375 = vmatpush.bf16.msra.mxu3 %v573_v23 }
  0x1a   :  { %337 = vmatpush.bf16.msra.mxu0 %v548_v24 }
  0x1b   :  { %363 = vmatpush.bf16.msra.mxu2 %v564_v25 }
  0x1c   :  { %350 = vmatpush.bf16.msra.mxu1 %v556_v28 }
  0x1d   :  { %376 = vmatpush.bf16.msra.mxu3 %v572_v29 }
  0x1e   :  { %338 = vmatpush.bf16.msra.mxu0 %v547_v32 }
  0x1f   :  { %364 = vmatpush.bf16.msra.mxu2 %v563_v33 }
  0x20   :  { %351 = vmatpush.bf16.msra.mxu1 %v555_v36 }
  0x21   :  { %377 = vmatpush.bf16.msra.mxu3 %v571_v37  ;;  %339 = vmatmul.bf16.vlgmr.msra.gmra.mxu0 %v102_v39 }
  0x22   :  { %387 = vmatpush.bf16.msrb.mxu0 %v582_v38  ;;  %365 = vmatmul.bf16.vlgmr.msra.gmra.mxu2 %v104_v40 }
  0x23   :  { %352 = vmatmul.bf16.vlgmr.msra.gmra.mxu1 %v103_v41 }
  0x24   :  { %378 = vmatmul.bf16.vlgmr.msra.gmra.mxu3 %v105_v42 }
  0x26   :  { %388 = vmatpush.bf16.msrb.mxu0 %v581_v43 }
  0x2a   :  { %389 = vmatpush.bf16.msrb.mxu0 %v580_v44 }
  0x2e   :  { %390 = vmatpush.bf16.msrb.mxu0 %v579_v46 }
  0x31   :  { %546 = vmatmul.msk.bf16.vlgmr.msrb.gmra.mxu0 %vm327_vm0, %v106_v48 }
  0x9e   :  { %v340_v49 = vpop.f32.mrf.mxu0 }
  0x9f   :  { %v341_v52 = vadd.f32 %v583_v50, %v340_v49 }
  0xa0   :  { %v353_v51 = vpop.f32.mrf.mxu1 }
  0xa1   :  { %v354_v56 = vadd.f32 %v353_v51, %v341_v52 }
  0xa5   :  { %v366_v53 = vpop.f32.mrf.mxu2 }
  0xa6   :  { %v342_v55 = vpop.f32.mrf.mxu0  ;;  %v367_v58 = vadd.f32 %v366_v53, %v354_v56 }
  0xa7   :  { %v379_v54 = vpop.f32.mrf.mxu3 }
  0xa8   :  { %v355_v57 = vpop.f32.mrf.mxu1  ;;  %v380_v60 = vadd.f32 %v379_v54, %v367_v58 }
  0xad   :  { %v368_v59 = vpop.f32.mrf.mxu2 }
  0xae   :  { %v392_v62 = vpop.f32.mrf.mxu0 }
  0xaf   :  { %v381_v61 = vpop.f32.mrf.mxu3  ;;  %v393_v63 = vadd.f32 %v392_v62, %v380_v60 }
  0xb1   :  { %397 = vst.msk [vmem:[%s730_s3] sm:$0xff] %vm396_vm1, %v393_v63 }
  0xb6   :  { %v394_v0 = vpop.f32.mrf.mxu0 }

// kernel: mnist_convnet_forward.6
= control target key start
LH: loop header
LB: loop body
LE: loop exit
PB: predicated region body
PF: predicated region fallthrough
CT: control target
= control target key end

     0   :  { %vm190_vm0 = vcmask 261120   ;;  %vm549_vm1 = vcmask 519168   ;;  %s1054_s1 = inlined_call_operand.vmem [shape: bf16[288,64], index: 1, kind: input, shape index: {}]   ;;  %s1055_s0 = inlined_call_operand.vmem [shape: bf16[4,24,288], index: 0, kind: input, shape index: {}]   ;;  %s1056_s2 = inlined_call_operand.vmem [shape: f32[1,64], index: 2, kind: input, shape index: {}]   ;;  %s1057_s3 = inlined_call_operand.vmem [shape: bf16[24,64], index: 3, kind: output, shape index: {}]  }
   0x1   :  { %v765_v0 = vld [vmem:[%s1054_s1 + $0x38] sm:$0xff]  ;;  %v775_v2 = vld [vmem:[%s1054_s1 + $0x88] sm:$0xff]  ;;  %v782_v3 = vld [vmem:[%s1054_s1 + $0x30] sm:$0xff] }
   0x2   :  { %v770_v1 = vld [vmem:[%s1054_s1 + $0x78] sm:$0xff]  ;;  %197 = vmatpush.bf16.msra.mxu0 %v765_v0  ;;  %v787_v4 = vld [vmem:[%s1054_s1 + $0x70] sm:$0xff]  ;;  %239 = vmatpush.bf16.msra.mxu2 %v775_v2  ;;  %v794_v5 = vld [vmem:[%s1054_s1 + $0x80] sm:$0xff] }
   0x3   :  { %215 = vmatpush.bf16.msra.mxu1 %v770_v1  ;;  %289 = vmatpush.bf16.msra.mxu3 %v765_v0  ;;  %v567_v6 = vld [vmem:[%s1055_s0 + $0x8] sm:$0xf]  ;;  %v723_v7 = vld [vmem:[%s1055_s0 + $0x10] sm:$0xf0]  ;;  %v822_v11 = vld [vmem:[%s1054_s1 + $0x20] sm:$0xff] }
   0x4   :  { %v568_v8 = vor.u32 %v723_v7, %v567_v6  ;;  %v807_v9 = vld [vmem:[%s1054_s1 + $0x28] sm:$0xff]  ;;  %v829_v12 = vld [vmem:[%s1054_s1 + $0x60] sm:$0xff]  ;;  %v836_v13 = vld [vmem:[%s1054_s1 + $0x18] sm:$0xff] }
   0x5   :  { %v814_v10 = vld [vmem:[%s1054_s1 + $0x68] sm:$0xff]  ;;  %v843_v14 = vld [vmem:[%s1054_s1 + $0x58] sm:$0xff]  ;;  %v56_v15 = vld [vmem:[%s1055_s0 + $0x20] sm:$0xf] }
   0x6   :  { %198 = vmatpush.bf16.msra.mxu0 %v782_v3  ;;  %240 = vmatpush.bf16.msra.mxu2 %v794_v5  ;;  %v853_v16 = vld [vmem:[%s1054_s1 + $0x10] sm:$0xff]  ;;  %v71_v17 = vunpack.c.l.b16 %v56_v15  ;;  %v867_v20 = vld [vmem:[%s1054_s1 + $0x8] sm:$0xff]  ;;  %v880_v22 = vld [vmem:[%s1054_s1] sm:$0xff] }
   0x7   :  { %216 = vmatpush.bf16.msra.mxu1 %v787_v4  ;;  %290 = vmatpush.bf16.msra.mxu3 %v782_v3  ;;  %v860_v18 = vld [vmem:[%s1054_s1 + $0x50] sm:$0xff]  ;;  %v874_v21 = vld [vmem:[%s1054_s1 + $0x48] sm:$0xff]  ;;  %v885_v23 = vld [vmem:[%s1054_s1 + $0x40] sm:$0xff] }
   0x8   :  { %v77_v19 = vpack.c.b16 %v71_v17, %v71_v17  ;;  %v559_v24 = vld [vmem:[%s1055_s0] sm:$0xf]  ;;  %v722_v25 = vld [vmem:[%s1055_s0 + $0x8] sm:$0xf0]  ;;  %v721_v26 = vld [vmem:[%s1055_s0 + $0x4] sm:$0xf] }
   0x9   :  { %641 = vmatmul.msk.bf16.vlgmr.msra.gmra.mxu2 %vm190_vm0, %v568_v8  ;;  %v561_v27 = vld [vmem:[%s1055_s0 + $0xc] sm:$0xf0]  ;;  %v651_v28 = vld [vmem:[%s1055_s0 + $0x24] sm:$0xf]  ;;  %v560_v30 = vor.u32 %v722_v25, %v559_v24  ;;  %v724_v33 = vld [vmem:[%s1055_s0 + $0x28] sm:$0xf] }
   0xa   :  { %307 = vmatpush.bf16.msrb.mxu2 %v770_v1  ;;  %199 = vmatpush.bf16.msra.mxu0 %v807_v9  ;;  %v725_v29 = vld [vmem:[%s1055_s0 + $0x2c] sm:$0xf0]  ;;  %v564_v31 = vor.u32 %v721_v26, %v561_v27  ;;  %v653_v34 = vld [vmem:[%s1055_s0 + $0x30] sm:$0xf0]  ;;  %v55_v36 = vld [vmem:[%s1055_s0 + $0x18] sm:$0xff] }
   0xb   :  { %217 = vmatpush.bf16.msra.mxu1 %v814_v10  ;;  %291 = vmatpush.bf16.msra.mxu3 %v807_v9  ;;  %v652_v32 = vor.u32 %v725_v29, %v651_v28  ;;  %v656_v35 = vor.u32 %v724_v33, %v653_v34  ;;  %v647_v37 = vld [vmem:[%s1055_s0 + $0x3c] sm:$0xff]  ;;  %v69_v38 = vunpack.c.l.b16 %v55_v36  ;;  %v70_v39 = vunpack.c.h.b16 %v55_v36  ;;  %v659_v46 = vld [vmem:[%s1055_s0 + $0x2c] sm:$0xf]  ;;  %v726_v47 = vld [vmem:[%s1055_s0 + $0x34] sm:$0xf0] }
   0xc   :  { %v270_v40 = vunpack.c.l.b16 %v647_v37  ;;  %v271_v44 = vunpack.c.h.b16 %v647_v37  ;;  %v671_v48 = vld [vmem:[%s1055_s0 + $0x48] sm:$0xf]  ;;  %v728_v49 = vld [vmem:[%s1055_s0 + $0x50] sm:$0xf0]  ;;  %v727_v50 = vld [vmem:[%s1055_s0 + $0x4c] sm:$0xf]  ;;  %v660_v52 = vor.u32 %v726_v47, %v659_v46 }
   0xd   :  { %v75_v41 = vpack.c.b16 %v69_v38, %v69_v38  ;;  %v76_v42 = vpack.c.b16 %v70_v39, %v70_v39  ;;  %v673_v51 = vld [vmem:[%s1055_s0 + $0x54] sm:$0xf0]  ;;  %v672_v53 = vor.u32 %v728_v49, %v671_v48  ;;  %v679_v55 = vld [vmem:[%s1055_s0 + $0x50] sm:$0xf]  ;;  %v729_v56 = vld [vmem:[%s1055_s0 + $0x58] sm:$0xf0] }
   0xe   :  { %308 = vmatpush.bf16.msrb.mxu2 %v787_v4  ;;  %200 = vmatpush.bf16.msra.mxu0 %v822_v11  ;;  %v276_v43 = vpack.c.b16 %v270_v40, %v270_v40  ;;  %v277_v45 = vpack.c.b16 %v271_v44, %v271_v44  ;;  %v676_v54 = vor.u32 %v727_v50, %v673_v51  ;;  %v648_v58 = vld [vmem:[%s1055_s0 + $0x44] sm:$0xf]  ;;  %v731_v6 = vld [vmem:[%s1055_s0 + $0x74] sm:$0xf0]  ;;  %v730_v7 = vld [vmem:[%s1055_s0 + $0x70] sm:$0xf] }
   0xf   :  { %218 = vmatpush.bf16.msra.mxu1 %v829_v12  ;;  %292 = vmatpush.bf16.msra.mxu3 %v822_v11  ;;  %v680_v57 = vor.u32 %v729_v56, %v679_v55  ;;  %v667_v59 = vld [vmem:[%s1055_s0 + $0x60] sm:$0xff]  ;;  %v272_v60 = vunpack.c.l.b16 %v648_v58  ;;  %v693_v8 = vld [vmem:[%s1055_s0 + $0x78] sm:$0xf0]  ;;  %v688_v17 = vld [vmem:[%s1055_s0 + $0x8c] sm:$0xf] }
  0x10   :  { %v365_v61 = vunpack.c.l.b16 %v667_v59  ;;  %v366_v62 = vunpack.c.h.b16 %v667_v59 }
  0x11   :  { %v278_v63 = vpack.c.b16 %v272_v60, %v272_v60 }
  0x12   :  { %309 = vmatpush.bf16.msrb.mxu2 %v814_v10  ;;  %201 = vmatpush.bf16.msra.mxu0 %v836_v13 }
  0x13   :  { %219 = vmatpush.bf16.msra.mxu1 %v843_v14  ;;  %293 = vmatpush.bf16.msra.mxu3 %v836_v13 }
  0x16   :  { %310 = vmatpush.bf16.msrb.mxu2 %v829_v12  ;;  %202 = vmatpush.bf16.msra.mxu0 %v853_v16 }
  0x17   :  { %220 = vmatpush.bf16.msra.mxu1 %v860_v18  ;;  %294 = vmatpush.bf16.msra.mxu3 %v853_v16 }
  0x19   :  { %642 = vmatmul.msk.bf16.gmra.mxu2 %vm190_vm0, %v77_v19  ;;  %v462_v19 = vunpack.c.l.b16 %v688_v17 }
  0x1a   :  { %311 = vmatpush.bf16.msrb.mxu2 %v843_v14  ;;  %203 = vmatpush.bf16.msra.mxu0 %v867_v20 }
  0x1b   :  { %221 = vmatpush.bf16.msra.mxu1 %v874_v21  ;;  %295 = vmatpush.bf16.msra.mxu3 %v867_v20 }
  0x1e   :  { %312 = vmatpush.bf16.msrb.mxu2 %v860_v18  ;;  %204 = vmatpush.bf16.msra.mxu0 %v880_v22 }
  0x1f   :  { %222 = vmatpush.bf16.msra.mxu1 %v885_v23  ;;  %296 = vmatpush.bf16.msra.mxu3 %v880_v22 }
  0x21   :  { %205 = vmatmul.bf16.vlgmr.msra.gmra.mxu0 %v560_v30 }
  0x22   :  { %313 = vmatpush.bf16.msrb.mxu2 %v874_v21  ;;  %223 = vmatmul.bf16.vlgmr.msra.gmra.mxu1 %v564_v31 }
  0x23   :  { %402 = vmatpush.bf16.msrb.mxu3 %v770_v1  ;;  %384 = vmatpush.bf16.msrb.mxu1 %v765_v0 }
  0x24   :  { %297 = vmatmul.bf16.vlgmr.msra.gmra.mxu3 %v652_v32  ;;  %331 = vmatpush.bf16.msrb.mxu0 %v775_v2 }
  0x26   :  { %314 = vmatpush.bf16.msrb.mxu2 %v885_v23 }
  0x27   :  { %403 = vmatpush.bf16.msrb.mxu3 %v787_v4  ;;  %385 = vmatpush.bf16.msrb.mxu1 %v782_v3 }
  0x28   :  { %332 = vmatpush.bf16.msrb.mxu0 %v794_v5 }
  0x29   :  { %315 = vmatmul.bf16.vlgmr.msrb.gmra.mxu2 %v656_v35 }
  0x2a   :  { %426 = vmatpush.bf16.msra.mxu2 %v775_v2 }
  0x2b   :  { %404 = vmatpush.bf16.msrb.mxu3 %v814_v10  ;;  %386 = vmatpush.bf16.msrb.mxu1 %v807_v9 }
  0x2c   :  { %479 = vmatpush.bf16.msra.mxu0 %v765_v0 }
  0x2e   :  { %427 = vmatpush.bf16.msra.mxu2 %v794_v5 }
  0x2f   :  { %405 = vmatpush.bf16.msrb.mxu3 %v829_v12  ;;  %387 = vmatpush.bf16.msrb.mxu1 %v822_v11 }
  0x30   :  { %480 = vmatpush.bf16.msra.mxu0 %v782_v3 }
  0x31   :  { %210 = vmatmul.bf16.gmra.mxu0 %v75_v41 }
  0x32   :  { %733 = vmatpush.bf16.msrb.mxu2 %v765_v0  ;;  %228 = vmatmul.bf16.gmra.mxu1 %v76_v42  ;;  %v371_v0 = vpack.c.b16 %v365_v61, %v365_v61 }
  0x33   :  { %406 = vmatpush.bf16.msrb.mxu3 %v843_v14  ;;  %388 = vmatpush.bf16.msrb.mxu1 %v836_v13 }
  0x34   :  { %481 = vmatpush.bf16.msra.mxu0 %v807_v9  ;;  %302 = vmatmul.bf16.gmra.mxu3 %v276_v43 }
  0x36   :  { %734 = vmatpush.bf16.msrb.mxu2 %v782_v3 }
  0x37   :  { %407 = vmatpush.bf16.msrb.mxu3 %v860_v18  ;;  %389 = vmatpush.bf16.msrb.mxu1 %v853_v16 }
  0x38   :  { %482 = vmatpush.bf16.msra.mxu0 %v822_v11 }
  0x39   :  { %320 = vmatmul.bf16.gmra.mxu2 %v277_v45 }
  0x3a   :  { %735 = vmatpush.bf16.msrb.mxu2 %v807_v9  ;;  %v699_v9 = vld [vmem:[%s1055_s0 + $0x74] sm:$0xf] }
  0x3b   :  { %408 = vmatpush.bf16.msrb.mxu3 %v874_v21  ;;  %390 = vmatpush.bf16.msrb.mxu1 %v867_v20 }
  0x3c   :  { %483 = vmatpush.bf16.msra.mxu0 %v836_v13 }
  0x3e   :  { %736 = vmatpush.bf16.msrb.mxu2 %v822_v11 }
  0x3f   :  { %409 = vmatpush.bf16.msrb.mxu3 %v885_v23  ;;  %391 = vmatpush.bf16.msrb.mxu1 %v880_v22 }
  0x40   :  { %484 = vmatpush.bf16.msra.mxu0 %v853_v16 }
  0x41   :  { %661 = vmatmul.msk.bf16.vlgmr.msrb.gmra.mxu0 %vm190_vm0, %v660_v52 }
  0x42   :  { %737 = vmatpush.bf16.msrb.mxu2 %v836_v13  ;;  %392 = vmatmul.bf16.vlgmr.msrb.gmra.mxu1 %v672_v53 }
  0x43   :  { %521 = vmatpush.bf16.msra.mxu3 %v775_v2  ;;  %497 = vmatpush.bf16.msra.mxu1 %v770_v1  ;;  %v372_v1 = vpack.c.b16 %v366_v62, %v366_v62  ;;  %v668_v2 = vld [vmem:[%s1055_s0 + $0x68] sm:$0xf] }
  0x44   :  { %485 = vmatpush.bf16.msra.mxu0 %v867_v20  ;;  %410 = vmatmul.bf16.vlgmr.msrb.gmra.mxu3 %v676_v54  ;;  %v367_v3 = vunpack.c.l.b16 %v668_v2 }
  0x46   :  { %738 = vmatpush.bf16.msrb.mxu2 %v853_v16 }
  0x47   :  { %522 = vmatpush.bf16.msra.mxu3 %v794_v5  ;;  %498 = vmatpush.bf16.msra.mxu1 %v787_v4  ;;  %v373_v4 = vpack.c.b16 %v367_v3, %v367_v3  ;;  %v691_v5 = vld [vmem:[%s1055_s0 + $0x6c] sm:$0xf] }
  0x48   :  { %486 = vmatpush.bf16.msra.mxu0 %v880_v22  ;;  %v692_v11 = vor.u32 %v731_v6, %v691_v5 }
  0x49   :  { %681 = vmatmul.msk.bf16.vlgmr.msra.gmra.mxu2 %vm190_vm0, %v680_v57 }
  0x4a   :  { %739 = vmatpush.bf16.msrb.mxu2 %v867_v20 }
  0x4b   :  { %499 = vmatpush.bf16.msra.mxu1 %v814_v10  ;;  %v732_v10 = vld [vmem:[%s1055_s0 + $0x7c] sm:$0xf0] }
  0x4c   :  { %v700_v13 = vor.u32 %v732_v10, %v699_v9 }
  0x4e   :  { %740 = vmatpush.bf16.msrb.mxu2 %v880_v22 }
  0x4f   :  { %500 = vmatpush.bf16.msra.mxu1 %v829_v12  ;;  %v696_v12 = vor.u32 %v730_v7, %v693_v8 }
  0x51   :  { %662 = vmatmul.msk.bf16.gmra.mxu0 %vm190_vm0, %v278_v63 }
  0x52   :  { %397 = vmatmul.bf16.gmra.mxu1 %v371_v0 }
  0x53   :  { %501 = vmatpush.bf16.msra.mxu1 %v843_v14  ;;  %v687_v14 = vld [vmem:[%s1055_s0 + $0x84] sm:$0xff] }
  0x54   :  { %415 = vmatmul.bf16.gmra.mxu3 %v372_v1  ;;  %v460_v15 = vunpack.c.l.b16 %v687_v14 }
  0x56   :  { %v466_v16 = vpack.c.b16 %v460_v15, %v460_v15 }
  0x57   :  { %502 = vmatpush.bf16.msra.mxu1 %v860_v18  ;;  %v461_v18 = vunpack.c.h.b16 %v687_v14 }
  0x59   :  { %682 = vmatmul.msk.bf16.gmra.mxu2 %vm190_vm0, %v373_v4  ;;  %v467_v20 = vpack.c.b16 %v461_v18, %v461_v18 }
  0x5b   :  { %503 = vmatpush.bf16.msra.mxu1 %v874_v21  ;;  %v468_v21 = vpack.c.b16 %v462_v19, %v462_v19 }
  0x5f   :  { %504 = vmatpush.bf16.msra.mxu1 %v885_v23 }
  0x61   :  { %487 = vmatmul.bf16.vlgmr.msra.gmra.mxu0 %v692_v11 }
  0x62   :  { %505 = vmatmul.bf16.vlgmr.msra.gmra.mxu1 %v696_v12  ;;  %v741_v12 = vld [vmem:[%s1056_s2] ss:$0 sm:$0xff] }
  0x64   :  { %701 = vmatmul.msk.bf16.vlgmr.msra.gmra.mxu3 %vm190_vm0, %v700_v13 }
  0x69   :  { %492 = vmatmul.bf16.vlgmr.msrb.gmra.mxu2 %v466_v16 }
  0x72   :  { %510 = vmatmul.bf16.gmra.mxu1 %v467_v20 }
  0x74   :  { %702 = vmatmul.msk.bf16.gmra.mxu3 %vm190_vm0, %v468_v21 }
  0x8c   :  { %v242_v22 = vpop.f32.mrf.mxu2 }
  0x94   :  { %v244_v23 = vpop.f32.mrf.mxu2 }
  0x9c   :  { %v247_v24 = vpop.f32.mrf.mxu2 }
  0x9e   :  { %v206_v25 = vpop.f32.mrf.mxu0 }
  0x9f   :  { %v224_v26 = vpop.f32.mrf.mxu1 }
  0xa0   :  { %v225_v27 = vadd.f32 %v224_v26, %v206_v25 }
  0xa2   :  { %v243_v28 = vadd.f32 %v242_v22, %v225_v27 }
  0xa4   :  { %v249_v29 = vpop.f32.mrf.mxu2 }
  0xa6   :  { %v208_v31 = vpop.f32.mrf.mxu0 }
  0xa7   :  { %v298_v30 = vpop.f32.mrf.mxu3  ;;  %v226_v32 = vpop.f32.mrf.mxu1 }
  0xa8   :  { %v227_v33 = vadd.f32 %v226_v32, %v208_v31 }
  0xaa   :  { %v245_v34 = vadd.f32 %v244_v23, %v227_v33 }
  0xac   :  { %v316_v36 = vpop.f32.mrf.mxu2 }
  0xad   :  { %v317_v63 = vadd.f32 %v316_v36, %v298_v30 }
  0xae   :  { %v211_v37 = vpop.f32.mrf.mxu0 }
  0xaf   :  { %v300_v35 = vpop.f32.mrf.mxu3  ;;  %v229_v38 = vpop.f32.mrf.mxu1 }
  0xb0   :  { %v230_v39 = vadd.f32 %v229_v38, %v211_v37 }
  0xb2   :  { %v1036_v40 = vadd.f32 %v247_v24, %v230_v39 }
  0xb4   :  { %v318_v42 = vpop.f32.mrf.mxu2 }
  0xb5   :  { %v319_v9 = vadd.f32 %v318_v42, %v300_v35 }
  0xb6   :  { %v213_v43 = vpop.f32.mrf.mxu0 }
  0xb7   :  { %v303_v41 = vpop.f32.mrf.mxu3  ;;  %v231_v44 = vpop.f32.mrf.mxu1 }
  0xbc   :  { %v321_v46 = vpop.f32.mrf.mxu2 }
  0xbd   :  { %v322_v25 = vadd.f32 %v321_v46, %v303_v41 }
  0xbe   :  { %v334_v47 = vpop.f32.mrf.mxu0 }
  0xbf   :  { %v305_v45 = vpop.f32.mrf.mxu3  ;;  %v393_v48 = vpop.f32.mrf.mxu1  ;;  %v335_v2 = vadd.f32 %v334_v47, %v317_v63 }
  0xc1   :  { %v343_v6 = vmax.f32 %v243_v28, %v335_v2 }
  0xc4   :  { %v323_v49 = vpop.f32.mrf.mxu2 }
  0xc6   :  { %v336_v51 = vpop.f32.mrf.mxu0 }
  0xc7   :  { %v411_v50 = vpop.f32.mrf.mxu3  ;;  %v395_v52 = vpop.f32.mrf.mxu1  ;;  %v337_v14 = vadd.f32 %v336_v51, %v319_v9 }
  0xc8   :  { %v412_v3 = vadd.f32 %v411_v50, %v393_v48 }
  0xc9   :  { %v344_v20 = vmax.f32 %v245_v34, %v337_v14 }
  0xcc   :  { %v429_v54 = vpop.f32.mrf.mxu2 }
  0xcd   :  { %v430_v4 = vadd.f32 %v429_v54, %v412_v3 }
  0xce   :  { %v339_v55 = vpop.f32.mrf.mxu0 }
  0xcf   :  { %v413_v53 = vpop.f32.mrf.mxu3  ;;  %v398_v56 = vpop.f32.mrf.mxu1  ;;  %v438_v10 = vmax.f32 %v343_v6, %v430_v4  ;;  %v340_v30 = vadd.f32 %v339_v55, %v322_v25 }
  0xd0   :  { %v414_v15 = vadd.f32 %v413_v53, %v395_v52 }
  0xd1   :  { %v345_v36 = vmax.f32 %v1036_v40, %v340_v30 }
  0xd4   :  { %v431_v58 = vpop.f32.mrf.mxu2 }
  0xd5   :  { %v432_v18 = vadd.f32 %v431_v58, %v414_v15 }
  0xd6   :  { %v341_v59 = vpop.f32.mrf.mxu0 }
  0xd7   :  { %v416_v57 = vpop.f32.mrf.mxu3  ;;  %v400_v60 = vpop.f32.mrf.mxu1  ;;  %v439_v26 = vmax.f32 %v344_v20, %v432_v18 }
  0xd8   :  { %v417_v31 = vadd.f32 %v416_v57, %v398_v56 }
  0xdc   :  { %v434_v62 = vpop.f32.mrf.mxu2 }
  0xdd   :  { %v435_v33 = vadd.f32 %v434_v62, %v417_v31 }
  0xde   :  { %v488_v0 = vpop.f32.mrf.mxu0 }
  0xdf   :  { %v418_v61 = vpop.f32.mrf.mxu3  ;;  %v506_v1 = vpop.f32.mrf.mxu1  ;;  %v440_v41 = vmax.f32 %v345_v36, %v435_v33 }
  0xe0   :  { %v507_v5 = vadd.f32 %v506_v1, %v488_v0 }
  0xe4   :  { %v436_v7 = vpop.f32.mrf.mxu2 }
  0xe6   :  { %v490_v17 = vpop.f32.mrf.mxu0 }
  0xe7   :  { %v524_v8 = vpop.f32.mrf.mxu3  ;;  %v508_v13 = vpop.f32.mrf.mxu1 }
  0xe8   :  { %v525_v11 = vadd.f32 %v524_v8, %v507_v5  ;;  %v509_v22 = vadd.f32 %v508_v13, %v490_v17 }
  0xea   :  { %v533_v16 = vmax.f32 %v438_v10, %v525_v11 }
  0xec   :  { %v540_v19 = vadd.f32 %v741_v12, %v533_v16  ;;  %v493_v23 = vpop.f32.mrf.mxu2 }
  0xee   :  { %v543_v21 = vmax.f32 %v540_v19, 0.0 }
  0xef   :  { %v526_v24 = vpop.f32.mrf.mxu3  ;;  %v511_v29 = vpop.f32.mrf.mxu1 }
  0xf0   :  { %v546_v27 = vpack.c.bf16 %v543_v21, %v543_v21  ;;  %v527_v28 = vadd.f32 %v526_v24, %v509_v22  ;;  %v512_v35 = vadd.f32 %v511_v29, %v493_v23 }
  0xf2   :  { %550 = vst.msk [vmem:[%s1057_s3] sm:$0xf] %vm549_vm1, %v546_v27  ;;  %v534_v32 = vmax.f32 %v439_v26, %v527_v28 }
  0xf4   :  { %v541_v34 = vadd.f32 %v741_v12, %v534_v32  ;;  %v495_v38 = vpop.f32.mrf.mxu2 }
  0xf6   :  { %v544_v37 = vmax.f32 %v541_v34, 0.0 }
  0xf7   :  { %v529_v39 = vpop.f32.mrf.mxu3  ;;  %v513_v44 = vpop.f32.mrf.mxu1 }
  0xf8   :  { %v547_v42 = vpack.c.bf16 %v544_v37, %v544_v37  ;;  %v530_v43 = vadd.f32 %v529_v39, %v512_v35 }
  0xfa   :  { %551 = vst.msk [vmem:[%s1057_s3 + $0x4] sm:$0xf] %vm549_vm1, %v547_v42  ;;  %v535_v45 = vmax.f32 %v440_v41, %v530_v43 }
  0xfc   :  { %v542_v46 = vadd.f32 %v741_v12, %v535_v45 }
  0xfe   :  { %v545_v47 = vmax.f32 %v542_v46, 0.0 }
  0xff   :  { %v531_v48 = vpop.f32.mrf.mxu3 }
 0x100   :  { %v548_v49 = vpack.c.bf16 %v545_v47, %v545_v47 }
 0x102   :  { %552 = vst.msk [vmem:[%s1057_s3 + $0x8] sm:$0xf] %vm549_vm1, %v548_v49 }

</bundles_post_ra>
